<compile_context>
chip_gen: v7x
topology: tpu7x:2x2x1
jax: 0.10.0
libtpu: 0.0.40
codegen_flags: <defaults>
</compile_context>

<pallas_src>
import math
import functools

import numpy as np
import jax
import jax.numpy as jnp
from jax import lax
from jax.experimental import pallas as pl
from jax.experimental.pallas import tpu as pltpu


# ----------------------------------------------------------------------------- #
# Pallas kernel: one batch sample per grid step.
# ----------------------------------------------------------------------------- #
def _gcn_kernel(num_subset, inter_c, icp, c_out, has_down, inv_norm,
                x_ref, a_ref, w_ref, bmix_ref, btail_ref, o_ref):
    T = x_ref.shape[1]
    V = x_ref.shape[3]
    k_all = w_ref.shape[0]

    x3 = x_ref[0]                                   # (T, C, V) f32
    xb = x3.astype(jnp.bfloat16)

    # One batched channel-mix matmul for conv_a / conv_b / conv_d / down.
    w_b = jnp.broadcast_to(w_ref[...][None], (T, k_all, x_ref.shape[2]))   # bf16
    f_all = jnp.einsum('tkc,tcv->tkv', w_b, xb,
                       preferred_element_type=jnp.float32)                 # (T, K, V)
    f_all = f_all + bmix_ref[...][None]             # conv_a/b biases (others zero)

    y = jnp.zeros((T * c_out, V), jnp.float32)
    off_b = num_subset * icp
    off_d = 2 * num_subset * icp

    for i in range(num_subset):                     # static small loop (3)
        fa = f_all[:, i * icp:(i + 1) * icp, :].reshape(T * icp, V)
        fb = f_all[:, off_b + i * icp: off_b + (i + 1) * icp, :].reshape(T * icp, V)
        # S[v, w] = sum_{ic,t} fa[.., v] * fb[.., w]  (zero-padded rows contribute 0)
        s = lax.dot_general(fa.astype(jnp.bfloat16), fb.astype(jnp.bfloat16),
                            (((0,), (0,)), ((), ())),
                            preferred_element_type=jnp.float32) * inv_norm   # (V, V)

        # softmax over dim -2 (rows), then add A[i] (= A + PA)
        s = s - jnp.max(s, axis=0, keepdims=True)
        e = jnp.exp(s)
        p = e * pl.reciprocal(jnp.sum(e, axis=0, keepdims=True), approx=True)
        a_eff = (p + a_ref[i]).astype(jnp.bfloat16)                          # (V, V)

        # z_i = (Wd_i x) @ A_i   (conv_d commuted with the aggregation; BN scale
        # already folded into the Wd rows of the stacked weight matrix)
        h = f_all[:, off_d + i * c_out: off_d + (i + 1) * c_out, :]
        h = h.reshape(T * c_out, V).astype(jnp.bfloat16)
        y = y + jnp.dot(h, a_eff, preferred_element_type=jnp.float32)

    # residual branch
    if has_down:
        off_dn = off_d + num_subset * c_out
        y = y + f_all[:, off_dn: off_dn + c_out, :].reshape(T * c_out, V)
    else:
        y = y + x3.reshape(T * c_out, V)            # identity (C == Cout)

    # folded per-channel bias (conv_d biases + BN shift + down bias/BN) and ReLU
    y = y + btail_ref[...]
    o_ref[0] = jnp.maximum(y, 0.0)


# ----------------------------------------------------------------------------- #
# Wrapper: weight stacking / BN folding (plain-JAX glue) + pallas_call
# ----------------------------------------------------------------------------- #
def unit_gcn_forward(x, params, *, num_subset=3, eps=1e-5):
    N, C, T, V = x.shape
    Wa, ba = params["Wa"], params["ba"]            # (S, ic, C), (S, ic)
    Wb, bb = params["Wb"], params["bb"]
    Wd, bd = params["Wd"], params["bd"]            # (S, Co, C), (S, Co)
    inter_c = Wa.shape[1]
    Cout = Wd.shape[1]
    S = num_subset
    assert Cout % 8 == 0, "out_channels must be a multiple of 8"
    icp = ((inter_c + 7) // 8) * 8                 # pad embed rows to f32 tile

    # main BN (inference): scale folded into Wd, shift into the output bias
    g, beta, rm, rv = params["bn_gamma"], params["bn_beta"], params["bn_mean"], params["bn_var"]
    sc = g / jnp.sqrt(rv + eps)                                         # (Cout,)
    bias_out = sc * jnp.sum(bd, axis=0) + (beta - rm * sc)              # (Cout,)

    has_down = (C != Cout)
    if has_down:
        dg, dbt, dm, dv = (params["dbn_gamma"], params["dbn_beta"],
                           params["dbn_mean"], params["dbn_var"])
        dsc = dg / jnp.sqrt(dv + eps)
        w_down = params["Wdn"] * dsc[:, None]                           # (Cout, C)
        bias_out = bias_out + (params["bdn"] - dm) * dsc + dbt

    def pad_rows(w, b, rows):
        r = w.shape[1]
        return (jnp.pad(w, ((0, 0), (0, rows - r), (0, 0))),
                jnp.pad(b, ((0, 0), (0, rows - r))))

    Wap, bap = pad_rows(Wa, ba, icp)
    Wbp, bbp = pad_rows(Wb, bb, icp)
    Wd_fold = Wd * sc[None, :, None]                                    # (S, Cout, C)

    w_blocks = [Wap.reshape(S * icp, C), Wbp.reshape(S * icp, C),
                Wd_fold.reshape(S * Cout, C)]
    b_blocks = [bap.reshape(S * icp), bbp.reshape(S * icp),
                jnp.zeros((S * Cout,), jnp.float32)]
    if has_down:
        w_blocks.append(w_down)
        b_blocks.append(jnp.zeros((Cout,), jnp.float32))
    w_all = jnp.concatenate(w_blocks, axis=0).astype(jnp.bfloat16)      # (K_all, C)
    bias_mix = jnp.concatenate(b_blocks, axis=0)[:, None].astype(jnp.float32)
    k_all = w_all.shape[0]

    bias_tail = jnp.tile(bias_out, (T,))[:, None].astype(jnp.float32)   # (T*Cout, 1)
    a_sum = (params["A"] + params["PA"]).astype(jnp.float32)            # (S, V, V)
    x_t = x.transpose(0, 2, 1, 3).astype(jnp.float32)                   # (N, T, C, V)

    kernel = functools.partial(_gcn_kernel, S, inter_c, icp, Cout, has_down,
                               1.0 / float(inter_c * T))

    out = pl.pallas_call(
        kernel,
        out_shape=jax.ShapeDtypeStruct((N, T * Cout, V), jnp.float32),
        grid=(N,),
        in_specs=[
            pl.BlockSpec((1, T, C, V), lambda n: (n, 0, 0, 0)),         # x (time-major)
            pl.BlockSpec((S, V, V), lambda n: (0, 0, 0)),               # A + PA
            pl.BlockSpec((k_all, C), lambda n: (0, 0)),                 # stacked weights
            pl.BlockSpec((k_all, 1), lambda n: (0, 0)),                 # conv_a/b biases
            pl.BlockSpec((T * Cout, 1), lambda n: (0, 0)),              # folded out bias
        ],
        out_specs=pl.BlockSpec((1, T * Cout, V), lambda n: (n, 0, 0)),
        compiler_params=pltpu.CompilerParams(dimension_semantics=("parallel",)),
    )(x_t, a_sum, w_all, bias_mix, bias_tail)

    return out.reshape(N, T, Cout, V).transpose(0, 2, 1, 3)


# ----------------------------------------------------------------------------- #
# Pure-JAX reference (mirrors the PyTorch forward, eval-mode BN)
# ----------------------------------------------------------------------------- #
def unit_gcn_reference(x, params, *, num_subset=3, eps=1e-5):
    N, C, T, V = x.shape
    inter_c = params["Wa"].shape[1]
    Cout = params["Wd"].shape[1]
    a_sum = params["A"] + params["PA"]
    hp = "highest"

    y = None
    for i in range(num_subset):
        fa = jnp.einsum("oc,nctv->notv", params["Wa"][i], x, precision=hp) \
            + params["ba"][i][None, :, None, None]
        fb = jnp.einsum("oc,nctv->notv", params["Wb"][i], x, precision=hp) \
            + params["bb"][i][None, :, None, None]
        A1 = fa.transpose(0, 3, 1, 2).reshape(N, V, inter_c * T)
        A2 = fb.reshape(N, inter_c * T, V)
        Sm = jnp.matmul(A1, A2, precision=hp) / (inter_c * T)
        A1s = jax.nn.softmax(Sm, axis=-2) + a_sum[i]
        M = jnp.matmul(x.reshape(N, C * T, V), A1s, precision=hp).reshape(N, C, T, V)
        z = jnp.einsum("oc,nctv->notv", params["Wd"][i], M, precision=hp) \
            + params["bd"][i][None, :, None, None]
        y = z if y is None else y + z

    sc = params["bn_gamma"] / jnp.sqrt(params["bn_var"] + eps)
    y = y * sc[None, :, None, None] \
        + (params["bn_beta"] - params["bn_mean"] * sc)[None, :, None, None]

    if C == Cout:
        dwn = x
    else:
        dwn = jnp.einsum("oc,nctv->notv", params["Wdn"], x, precision=hp) \
            + params["bdn"][None, :, None, None]
        dsc = params["dbn_gamma"] / jnp.sqrt(params["dbn_var"] + eps)
        dwn = dwn * dsc[None, :, None, None] \
            + (params["dbn_beta"] - params["dbn_mean"] * dsc)[None, :, None, None]
    return jnp.maximum(y + dwn, 0.0)


# ----------------------------------------------------------------------------- #
def make_params(key, C_in, C_out, V, num_subset=3, coff_embedding=4):
    inter_c = C_out // coff_embedding
    ks = jax.random.split(key, 6)
    std_ab = math.sqrt(2.0 / inter_c)                         # kaiming fan_out, 1x1
    std_d = math.sqrt(2.0 / (C_out * C_in * 1 * num_subset))  # conv_branch_init
    std_dn = math.sqrt(2.0 / C_out)
    f32 = jnp.float32
    return dict(
        A=jax.random.uniform(ks[0], (num_subset, V, V), f32),
        PA=jnp.full((num_subset, V, V), 1e-6, f32),
        Wa=(jax.random.normal(ks[1], (num_subset, inter_c, C_in), f32) * std_ab),
        ba=jnp.zeros((num_subset, inter_c), f32),
        Wb=(jax.random.normal(ks[2], (num_subset, inter_c, C_in), f32) * std_ab),
        bb=jnp.zeros((num_subset, inter_c), f32),
        Wd=(jax.random.normal(ks[3], (num_subset, C_out, C_in), f32) * std_d),
        bd=jnp.zeros((num_subset, C_out), f32),
        Wdn=(jax.random.normal(ks[4], (C_out, C_in), f32) * std_dn),
        bdn=jnp.zeros((C_out,), f32),
        bn_gamma=jnp.full((C_out,), 1e-6, f32), bn_beta=jnp.zeros((C_out,), f32),
        bn_mean=jnp.zeros((C_out,), f32), bn_var=jnp.ones((C_out,), f32),
        dbn_gamma=jnp.ones((C_out,), f32), dbn_beta=jnp.zeros((C_out,), f32),
        dbn_mean=jnp.zeros((C_out,), f32), dbn_var=jnp.ones((C_out,), f32),
    )


if __name__ == "__main__":
    N, C_in, C_out, T, V = 2, 4, 8, 16, 16     # inter_c = 2, num_subset = 3
    key = jax.random.PRNGKey(0)
    kp, kx = jax.random.split(key)
    params = make_params(kp, C_in, C_out, V)
    x = jax.random.normal(kx, (N, C_in, T, V), jnp.float32)

    # module-faithful init (bn_gamma = 1e-6, as bn_init(self.bn, 1e-6))
    out = jax.block_until_ready(unit_gcn_forward(x, params))
    ref = jax.block_until_ready(unit_gcn_reference(x, params))
    assert out.shape == (N, C_out, T, V)
    np.testing.assert_allclose(np.asarray(out), np.asarray(ref), rtol=2e-2, atol=2e-2)

    # second check with bn_gamma = 1.0 so the attention / conv_d hot path is
    # actually exercised numerically (not drowned by the 1e-6 BN scale).
    params_hot = dict(params, bn_gamma=jnp.ones((C_out,), jnp.float32))
    out2 = jax.block_until_ready(unit_gcn_forward(x, params_hot))
    ref2 = jax.block_until_ready(unit_gcn_reference(x, params_hot))
    np.testing.assert_allclose(np.asarray(out2), np.asarray(ref2), rtol=2e-2, atol=2e-2)

    print("KERNEL_OK")
</pallas_src>

<mosaic_0001>
module attributes {stable_mosaic.version = 11 : i64} {
  func.func @_gcn_kernel(%arg0: i32, %arg1: memref<1x16x4x16xf32, #tpu.memory_space<vmem>>, %arg2: memref<3x16x16xf32, #tpu.memory_space<vmem>>, %arg3: memref<80x4xbf16, #tpu.memory_space<vmem>>, %arg4: memref<80x1xf32, #tpu.memory_space<vmem>>, %arg5: memref<128x1xf32, #tpu.memory_space<vmem>>, %arg6: memref<1x128x16xf32, #tpu.memory_space<vmem>>) attributes {dimension_semantics = [#tpu.dimension_semantics<parallel>], iteration_bounds = array<i64: 2>, scalar_prefetch = 0 : i64, scratch_operands = 0 : i64, tpu.core_type = #tpu.core_type<tc>, window_params = [{transform_indices = @transform_0, window_bounds = array<i64: 1, 16, 4, 16>}, {pipeline_mode = #tpu.pipeline_mode<synchronous>, transform_indices = @transform_1, window_bounds = array<i64: 3, 16, 16>}, {pipeline_mode = #tpu.pipeline_mode<synchronous>, transform_indices = @transform_2, window_bounds = array<i64: 80, 4>}, {pipeline_mode = #tpu.pipeline_mode<synchronous>, transform_indices = @transform_3, window_bounds = array<i64: 80, 1>}, {pipeline_mode = #tpu.pipeline_mode<synchronous>, transform_indices = @transform_4, window_bounds = array<i64: 128, 1>}, {transform_indices = @transform_5, window_bounds = array<i64: 1, 128, 16>}]} {
    %c0 = arith.constant 0 : index
    %c0_0 = arith.constant 0 : index
    %c0_1 = arith.constant 0 : index
    %c0_2 = arith.constant 0 : index
    %0 = vector.load %arg1[%c0, %c0_0, %c0_1, %c0_2] : memref<1x16x4x16xf32, #tpu.memory_space<vmem>>, vector<1x16x4x16xf32>
    %1 = vector.shape_cast %0 : vector<1x16x4x16xf32> to vector<16x4x16xf32>
    %2 = arith.truncf %1 : vector<16x4x16xf32> to vector<16x4x16xbf16>
    %c0_3 = arith.constant 0 : index
    %c0_4 = arith.constant 0 : index
    %3 = vector.load %arg3[%c0_3, %c0_4] : memref<80x4xbf16, #tpu.memory_space<vmem>>, vector<80x4xbf16>
    %4 = vector.shape_cast %3 : vector<80x4xbf16> to vector<1x80x4xbf16>
    %5 = vector.shape_cast %4 : vector<1x80x4xbf16> to vector<1x80x4xbf16>
    %6 = vector.broadcast %5 : vector<1x80x4xbf16> to vector<16x80x4xbf16>
    "tpu.trace_start"() <{level = 10 : i32, message = "tkc,tcv->tkv"}> : () -> ()
    %cst = arith.constant dense<0.000000e+00> : vector<16x80x16xf32>
    %7 = tpu.matmul %6, %2, %cst {dimension_numbers = #tpu.dot_dimension_numbers<[2], [1], [1], [2], [0, 0, 0, 1, 1, 2], [0], [0]>} : vector<16x80x4xbf16>, vector<16x4x16xbf16>, vector<16x80x16xf32> -> vector<16x80x16xf32>
    "tpu.trace_stop"() : () -> ()
    %c0_5 = arith.constant 0 : index
    %c0_6 = arith.constant 0 : index
    %8 = vector.load %arg4[%c0_5, %c0_6] : memref<80x1xf32, #tpu.memory_space<vmem>>, vector<80x1xf32>
    %9 = vector.shape_cast %8 : vector<80x1xf32> to vector<1x80x1xf32>
    %10 = vector.broadcast %9 : vector<1x80x1xf32> to vector<16x80x16xf32>
    %11 = arith.addf %7, %10 : vector<16x80x16xf32>
    %cst_7 = arith.constant 0.000000e+00 : f32
    %12 = vector.broadcast %cst_7 : f32 to vector<128x16xf32>
    %13 = vector.extract_strided_slice %11 {offsets = [0, 0, 0], sizes = [16, 8, 16], strides = [1, 1, 1]} : vector<16x80x16xf32> to vector<16x8x16xf32>
    %14 = vector.shape_cast %13 : vector<16x8x16xf32> to vector<128x16xf32>
    %15 = vector.extract_strided_slice %11 {offsets = [0, 24, 0], sizes = [16, 8, 16], strides = [1, 1, 1]} : vector<16x80x16xf32> to vector<16x8x16xf32>
    %16 = vector.shape_cast %15 : vector<16x8x16xf32> to vector<128x16xf32>
    %17 = arith.truncf %14 : vector<128x16xf32> to vector<128x16xbf16>
    %18 = arith.truncf %16 : vector<128x16xf32> to vector<128x16xbf16>
    %cst_8 = arith.constant dense<0.000000e+00> : vector<16x16xf32>
    %19 = tpu.matmul %17, %18, %cst_8 {dimension_numbers = #tpu.dot_dimension_numbers<[0], [0], [1], [1], [0, 1, 1, 1], [], []>} : vector<128x16xbf16>, vector<128x16xbf16>, vector<16x16xf32> -> vector<16x16xf32>
    %cst_9 = arith.constant 3.125000e-02 : f32
    %20 = vector.broadcast %cst_9 : f32 to vector<16x16xf32>
    %21 = arith.mulf %19, %20 : vector<16x16xf32>
    %cst_10 = arith.constant dense<0xFF800000> : vector<16xf32>
    %22 = vector.multi_reduction <maximumf>, %21, %cst_10 [0] : vector<16x16xf32> to vector<16xf32>
    %23 = vector.shape_cast %22 : vector<16xf32> to vector<1x16xf32>
    %24 = vector.broadcast %23 : vector<1x16xf32> to vector<16x16xf32>
    %25 = arith.subf %21, %24 : vector<16x16xf32>
    %26 = math.exp %25 : vector<16x16xf32>
    %cst_11 = arith.constant dense<0.000000e+00> : vector<16xf32>
    %27 = vector.multi_reduction <add>, %26, %cst_11 [0] : vector<16x16xf32> to vector<16xf32>
    %28 = vector.shape_cast %27 : vector<16xf32> to vector<1x16xf32>
    %29 = tpu.reciprocal %28 {approx = true} : vector<1x16xf32> -> vector<1x16xf32>
    %30 = vector.broadcast %29 : vector<1x16xf32> to vector<16x16xf32>
    %31 = arith.mulf %26, %30 : vector<16x16xf32>
    %c0_12 = arith.constant 0 : index
    %c0_13 = arith.constant 0 : index
    %c0_14 = arith.constant 0 : index
    %32 = vector.load %arg2[%c0_12, %c0_13, %c0_14] : memref<3x16x16xf32, #tpu.memory_space<vmem>>, vector<1x16x16xf32>
    %33 = vector.shape_cast %32 : vector<1x16x16xf32> to vector<16x16xf32>
    %34 = arith.addf %31, %33 : vector<16x16xf32>
    %35 = arith.truncf %34 : vector<16x16xf32> to vector<16x16xbf16>
    %36 = vector.extract_strided_slice %11 {offsets = [0, 48, 0], sizes = [16, 8, 16], strides = [1, 1, 1]} : vector<16x80x16xf32> to vector<16x8x16xf32>
    %37 = vector.shape_cast %36 : vector<16x8x16xf32> to vector<128x16xf32>
    %38 = arith.truncf %37 : vector<128x16xf32> to vector<128x16xbf16>
    %cst_15 = arith.constant dense<0.000000e+00> : vector<128x16xf32>
    %39 = tpu.matmul %38, %35, %cst_15 {dimension_numbers = #tpu.dot_dimension_numbers<[1], [0], [0], [1], [0, 0, 1, 1], [], []>} : vector<128x16xbf16>, vector<16x16xbf16>, vector<128x16xf32> -> vector<128x16xf32>
    %40 = arith.addf %12, %39 : vector<128x16xf32>
    %41 = vector.extract_strided_slice %11 {offsets = [0, 8, 0], sizes = [16, 8, 16], strides = [1, 1, 1]} : vector<16x80x16xf32> to vector<16x8x16xf32>
    %42 = vector.shape_cast %41 : vector<16x8x16xf32> to vector<128x16xf32>
    %43 = vector.extract_strided_slice %11 {offsets = [0, 32, 0], sizes = [16, 8, 16], strides = [1, 1, 1]} : vector<16x80x16xf32> to vector<16x8x16xf32>
    %44 = vector.shape_cast %43 : vector<16x8x16xf32> to vector<128x16xf32>
    %45 = arith.truncf %42 : vector<128x16xf32> to vector<128x16xbf16>
    %46 = arith.truncf %44 : vector<128x16xf32> to vector<128x16xbf16>
    %cst_16 = arith.constant dense<0.000000e+00> : vector<16x16xf32>
    %47 = tpu.matmul %45, %46, %cst_16 {dimension_numbers = #tpu.dot_dimension_numbers<[0], [0], [1], [1], [0, 1, 1, 1], [], []>} : vector<128x16xbf16>, vector<128x16xbf16>, vector<16x16xf32> -> vector<16x16xf32>
    %cst_17 = arith.constant 3.125000e-02 : f32
    %48 = vector.broadcast %cst_17 : f32 to vector<16x16xf32>
    %49 = arith.mulf %47, %48 : vector<16x16xf32>
    %cst_18 = arith.constant dense<0xFF800000> : vector<16xf32>
    %50 = vector.multi_reduction <maximumf>, %49, %cst_18 [0] : vector<16x16xf32> to vector<16xf32>
    %51 = vector.shape_cast %50 : vector<16xf32> to vector<1x16xf32>
    %52 = vector.broadcast %51 : vector<1x16xf32> to vector<16x16xf32>
    %53 = arith.subf %49, %52 : vector<16x16xf32>
    %54 = math.exp %53 : vector<16x16xf32>
    %cst_19 = arith.constant dense<0.000000e+00> : vector<16xf32>
    %55 = vector.multi_reduction <add>, %54, %cst_19 [0] : vector<16x16xf32> to vector<16xf32>
    %56 = vector.shape_cast %55 : vector<16xf32> to vector<1x16xf32>
    %57 = tpu.reciprocal %56 {approx = true} : vector<1x16xf32> -> vector<1x16xf32>
    %58 = vector.broadcast %57 : vector<1x16xf32> to vector<16x16xf32>
    %59 = arith.mulf %54, %58 : vector<16x16xf32>
    %c1 = arith.constant 1 : index
    %c0_20 = arith.constant 0 : index
    %c0_21 = arith.constant 0 : index
    %60 = vector.load %arg2[%c1, %c0_20, %c0_21] : memref<3x16x16xf32, #tpu.memory_space<vmem>>, vector<1x16x16xf32>
    %61 = vector.shape_cast %60 : vector<1x16x16xf32> to vector<16x16xf32>
    %62 = arith.addf %59, %61 : vector<16x16xf32>
    %63 = arith.truncf %62 : vector<16x16xf32> to vector<16x16xbf16>
    %64 = vector.extract_strided_slice %11 {offsets = [0, 56, 0], sizes = [16, 8, 16], strides = [1, 1, 1]} : vector<16x80x16xf32> to vector<16x8x16xf32>
    %65 = vector.shape_cast %64 : vector<16x8x16xf32> to vector<128x16xf32>
    %66 = arith.truncf %65 : vector<128x16xf32> to vector<128x16xbf16>
    %cst_22 = arith.constant dense<0.000000e+00> : vector<128x16xf32>
    %67 = tpu.matmul %66, %63, %cst_22 {dimension_numbers = #tpu.dot_dimension_numbers<[1], [0], [0], [1], [0, 0, 1, 1], [], []>} : vector<128x16xbf16>, vector<16x16xbf16>, vector<128x16xf32> -> vector<128x16xf32>
    %68 = arith.addf %40, %67 : vector<128x16xf32>
    %69 = vector.extract_strided_slice %11 {offsets = [0, 16, 0], sizes = [16, 8, 16], strides = [1, 1, 1]} : vector<16x80x16xf32> to vector<16x8x16xf32>
    %70 = vector.shape_cast %69 : vector<16x8x16xf32> to vector<128x16xf32>
    %71 = vector.extract_strided_slice %11 {offsets = [0, 40, 0], sizes = [16, 8, 16], strides = [1, 1, 1]} : vector<16x80x16xf32> to vector<16x8x16xf32>
    %72 = vector.shape_cast %71 : vector<16x8x16xf32> to vector<128x16xf32>
    %73 = arith.truncf %70 : vector<128x16xf32> to vector<128x16xbf16>
    %74 = arith.truncf %72 : vector<128x16xf32> to vector<128x16xbf16>
    %cst_23 = arith.constant dense<0.000000e+00> : vector<16x16xf32>
    %75 = tpu.matmul %73, %74, %cst_23 {dimension_numbers = #tpu.dot_dimension_numbers<[0], [0], [1], [1], [0, 1, 1, 1], [], []>} : vector<128x16xbf16>, vector<128x16xbf16>, vector<16x16xf32> -> vector<16x16xf32>
    %cst_24 = arith.constant 3.125000e-02 : f32
    %76 = vector.broadcast %cst_24 : f32 to vector<16x16xf32>
    %77 = arith.mulf %75, %76 : vector<16x16xf32>
    %cst_25 = arith.constant dense<0xFF800000> : vector<16xf32>
    %78 = vector.multi_reduction <maximumf>, %77, %cst_25 [0] : vector<16x16xf32> to vector<16xf32>
    %79 = vector.shape_cast %78 : vector<16xf32> to vector<1x16xf32>
    %80 = vector.broadcast %79 : vector<1x16xf32> to vector<16x16xf32>
    %81 = arith.subf %77, %80 : vector<16x16xf32>
    %82 = math.exp %81 : vector<16x16xf32>
    %cst_26 = arith.constant dense<0.000000e+00> : vector<16xf32>
    %83 = vector.multi_reduction <add>, %82, %cst_26 [0] : vector<16x16xf32> to vector<16xf32>
    %84 = vector.shape_cast %83 : vector<16xf32> to vector<1x16xf32>
    %85 = tpu.reciprocal %84 {approx = true} : vector<1x16xf32> -> vector<1x16xf32>
    %86 = vector.broadcast %85 : vector<1x16xf32> to vector<16x16xf32>
    %87 = arith.mulf %82, %86 : vector<16x16xf32>
    %c2 = arith.constant 2 : index
    %c0_27 = arith.constant 0 : index
    %c0_28 = arith.constant 0 : index
    %88 = vector.load %arg2[%c2, %c0_27, %c0_28] : memref<3x16x16xf32, #tpu.memory_space<vmem>>, vector<1x16x16xf32>
    %89 = vector.shape_cast %88 : vector<1x16x16xf32> to vector<16x16xf32>
    %90 = arith.addf %87, %89 : vector<16x16xf32>
    %91 = arith.truncf %90 : vector<16x16xf32> to vector<16x16xbf16>
    %92 = vector.extract_strided_slice %11 {offsets = [0, 64, 0], sizes = [16, 8, 16], strides = [1, 1, 1]} : vector<16x80x16xf32> to vector<16x8x16xf32>
    %93 = vector.shape_cast %92 : vector<16x8x16xf32> to vector<128x16xf32>
    %94 = arith.truncf %93 : vector<128x16xf32> to vector<128x16xbf16>
    %cst_29 = arith.constant dense<0.000000e+00> : vector<128x16xf32>
    %95 = tpu.matmul %94, %91, %cst_29 {dimension_numbers = #tpu.dot_dimension_numbers<[1], [0], [0], [1], [0, 0, 1, 1], [], []>} : vector<128x16xbf16>, vector<16x16xbf16>, vector<128x16xf32> -> vector<128x16xf32>
    %96 = arith.addf %68, %95 : vector<128x16xf32>
    %97 = vector.extract_strided_slice %11 {offsets = [0, 72, 0], sizes = [16, 8, 16], strides = [1, 1, 1]} : vector<16x80x16xf32> to vector<16x8x16xf32>
    %98 = vector.shape_cast %97 : vector<16x8x16xf32> to vector<128x16xf32>
    %99 = arith.addf %96, %98 : vector<128x16xf32>
    %c0_30 = arith.constant 0 : index
    %c0_31 = arith.constant 0 : index
    %100 = vector.load %arg5[%c0_30, %c0_31] : memref<128x1xf32, #tpu.memory_space<vmem>>, vector<128x1xf32>
    %101 = vector.broadcast %100 : vector<128x1xf32> to vector<128x16xf32>
    %102 = arith.addf %99, %101 : vector<128x16xf32>
    %cst_32 = arith.constant 0.000000e+00 : f32
    %103 = vector.broadcast %cst_32 : f32 to vector<128x16xf32>
    %104 = arith.maximumf %102, %103 : vector<128x16xf32>
    %c0_33 = arith.constant 0 : index
    %c0_34 = arith.constant 0 : index
    %c0_35 = arith.constant 0 : index
    %105 = vector.load %arg6[%c0_33, %c0_34, %c0_35] : memref<1x128x16xf32, #tpu.memory_space<vmem>>, vector<1x128x16xf32>
    %106 = vector.shape_cast %105 : vector<1x128x16xf32> to vector<128x16xf32>
    %107 = vector.shape_cast %104 : vector<128x16xf32> to vector<1x128x16xf32>
    tpu.vector_store %arg6[%c0_33, %c0_34, %c0_35], %107 {strides = array<i32>} : memref<1x128x16xf32, #tpu.memory_space<vmem>>, vector<1x128x16xf32>,
    return
  }
  func.func @transform_0(%arg0: i32) -> (i32, i32, i32, i32) {
    %c0_i32 = arith.constant 0 : i32
    %c0_i32_0 = arith.constant 0 : i32
    %c0_i32_1 = arith.constant 0 : i32
    %c0_i32_2 = arith.constant 0 : i32
    return %arg0, %c0_i32, %c0_i32_0, %c0_i32_1 : i32, i32, i32, i32
  }
  func.func @transform_1(%arg0: i32) -> (i32, i32, i32) {
    %c0_i32 = arith.constant 0 : i32
    %c0_i32_0 = arith.constant 0 : i32
    %c0_i32_1 = arith.constant 0 : i32
    %c0_i32_2 = arith.constant 0 : i32
    return %c0_i32, %c0_i32_0, %c0_i32_1 : i32, i32, i32
  }
  func.func @transform_2(%arg0: i32) -> (i32, i32) {
    %c0_i32 = arith.constant 0 : i32
    %c0_i32_0 = arith.constant 0 : i32
    %c0_i32_1 = arith.constant 0 : i32
    return %c0_i32, %c0_i32_0 : i32, i32
  }
  func.func @transform_3(%arg0: i32) -> (i32, i32) {
    %c0_i32 = arith.constant 0 : i32
    %c0_i32_0 = arith.constant 0 : i32
    %c0_i32_1 = arith.constant 0 : i32
    return %c0_i32, %c0_i32_0 : i32, i32
  }
  func.func @transform_4(%arg0: i32) -> (i32, i32) {
    %c0_i32 = arith.constant 0 : i32
    %c0_i32_0 = arith.constant 0 : i32
    %c0_i32_1 = arith.constant 0 : i32
    return %c0_i32, %c0_i32_0 : i32, i32
  }
  func.func @transform_5(%arg0: i32) -> (i32, i32, i32) {
    %c0_i32 = arith.constant 0 : i32
    %c0_i32_0 = arith.constant 0 : i32
    %c0_i32_1 = arith.constant 0 : i32
    return %arg0, %c0_i32, %c0_i32_0 : i32, i32, i32
  }
}

</mosaic_0001>

<bundles_post_ra>
// kernel: tpu_custom_call.1
= control target key start
LH: loop header
LB: loop body
LE: loop exit
PB: predicated region body
PF: predicated region fallthrough
CT: control target
= control target key end

     0   :  { %s3381_s18 = smov 0   ;;  %s4801_s0 = inlined_call_operand.vmem [shape: f32[2,16,4,16], index: 0, kind: input, shape index: {}]   ;;  %s4802_s1 = inlined_call_operand.vmem [shape: f32[3,16,16], index: 1, kind: input, shape index: {}]   ;;  %s4803_s2 = inlined_call_operand.vmem [shape: bf16[80,4], index: 2, kind: input, shape index: {}]   ;;  %s4804_s3 = inlined_call_operand.vmem [shape: f32[80,1], index: 3, kind: input, shape index: {}]   ;;  %s4805_s4 = inlined_call_operand.vmem [shape: f32[128,1], index: 4, kind: input, shape index: {}]   ;;  %s4806_s5 = inlined_call_operand.vmem [shape: f32[2,128,16], index: 5, kind: output, shape index: {}]  }
   0x1 LB: > { %s2528_s19 = sadd.s32 4294967295, %s3346_s18   ;;  %p2532_p0 = scmp.ge.s32.totalorder %s3346_s18, 1  ;;  %s3346_s18 = sphi %s3381_s18, %s15_s18  }
   0x2   : > { %p187_p1 = scmp.lt.s32.totalorder %s3346_s18, 3 }
   0x4   : > { %p188_p2 = pnand %p2532_p0, %p187_p1 }
   0x6   : > { %191 = sbr.rel (%p188_p2) target bundleno = 1223 (0x4c7), region = 40 }
   0xd   : > { %p215_p3 = scmp.lt.s32.totalorder %s2528_s19, 1  ;;  %v4807_v0 = vmov 0.0   ;;  %vm3349_vm0 = vmmov 0   ;;  %v3350_v1 = vmov 0   ;;  %vm369_vm1 = vcmask 1041408   ;;  %v269_v2 = vld [vmem:[%s4804_s3 + $0x8] sm:$0xff] }
   0xe   : > { %3270 = vmatprep.subr.bf16.mxu1 %v4807_v0  ;;  %2810 = vmatprep.mubr.msk.bf16.mxu1 %vm3349_vm0, %v4807_v0  ;;  %v268_v9 = vld [vmem:[%s4804_s3] sm:$0xff]  ;;  %v3416_v11 = vld [vmem:[%s4803_s2 + $0x8] sm:$0xff]   ;;  %vm353_vm2 = vcmask 31744   ;;  %v270_v17 = vld [vmem:[%s4804_s3 + $0x10] sm:$0xff]  ;;  %vm1661_vm3 = vcmask 130048  }
   0xf   : > { %s4982_s19 = smov (!%p215_p3, %s2528_s19), 1  ;;  %2804 = vmatprep.subr.bf16.mxu0 %v4807_v0  ;;  %2806 = vmatprep.mubr.msk.bf16.mxu0 %vm3349_vm0, %v4807_v0  ;;  %v3421_v12 = vld [vmem:[%s4803_s2] sm:$0xff]   ;;  %v271_v18 = vld [vmem:[%s4804_s3 + $0x18] sm:$0xff]  ;;  %v3450_v20 = vld [vmem:[%s4803_s2 + $0x10] sm:$0xff]  }
  0x10   : > { %s2652_s20 = sshll.u32 %s4982_s19, 6  ;;  %3315 = vset.pattern.permute.xlu0 %v3350_v1  ;;  %3316 = vset.pattern.permute.xlu1 %v3350_v1  ;;  %v272_v13 = vld [vmem:[%s4804_s3 + $0x20] sm:$0xff]  ;;  %v273_v22 = vld [vmem:[%s4804_s3 + $0x28] sm:$0xff]  ;;  %v3468_v23 = vld [vmem:[%s4803_s2 + $0x18] sm:$0xff]   ;;  %s2653_s29 = sshll.u32 %s4982_s19, 7 }
  0x11   : > { %s3401_s23 = scalar_lea.vmem %s4801_s0, %s2652_s20  ;;  %285 = vperm.xlu0 %3315, %v269_v2   ;;  %280 = vperm.xlu1 %3316, %v268_v9   ;;  %v3481_v24 = vld [vmem:[%s4803_s2 + $0x20] sm:$0xff]   ;;  %s4740_s7 = scalar_lea.vmem %s4806_s5, %s2653_s29 }
  0x12   : > { %v226_v3 = vld [vmem:[%s3401_s23] sm:$0xf]  ;;  %v227_v4 = vld [vmem:[%s3401_s23 + $0x4] sm:$0xf]  ;;  %v228_v5 = vld [vmem:[%s3401_s23 + $0x8] sm:$0xf] }
  0x13   : > { %v242_v6 = vpack.c.bf16 %v226_v3, %v226_v3  ;;  %v243_v7 = vpack.c.bf16 %v227_v4, %v227_v4  ;;  %v244_v8 = vpack.c.bf16 %v228_v5, %v228_v5  ;;  %v230_v16 = vld [vmem:[%s3401_s23 + $0x10] sm:$0xf]  ;;  %v229_v25 = vld [vmem:[%s3401_s23 + $0xc] sm:$0xf]  ;;  %v232_v28 = vld [vmem:[%s3401_s23 + $0x18] sm:$0xf] }
  0x14   : > { %v246_v19 = vpack.c.bf16 %v230_v16, %v230_v16  ;;  %v245_v26 = vpack.c.bf16 %v229_v25, %v229_v25  ;;  %v248_v29 = vpack.c.bf16 %v232_v28, %v232_v28  ;;  %v231_v31 = vld [vmem:[%s3401_s23 + $0x14] sm:$0xf]  ;;  %v234_v34 = vld [vmem:[%s3401_s23 + $0x20] sm:$0xf]  ;;  %v233_v37 = vld [vmem:[%s3401_s23 + $0x1c] sm:$0xf] }
  0x15   : > { %v371_v10 = vsel %vm369_vm1, %v242_v6, 0  ;;  %v447_v14 = vsel %vm369_vm1, %v243_v7, 0  ;;  %v523_v15 = vsel %vm369_vm1, %v244_v8, 0  ;;  %300 = vperm.xlu0 %3315, %v272_v13   ;;  %295 = vperm.xlu1 %3316, %v271_v18   ;;  %v247_v32 = vpack.c.bf16 %v231_v31, %v231_v31  ;;  %v236_v40 = vld [vmem:[%s3401_s23 + $0x28] sm:$0xf] }
  0x16   : > { %3271 = vmatpush3.bf16.msra.mxu1 %v371_v10  ;;  %2805 = vmatpush3.bf16.msra.mxu0 %v371_v10  ;;  %v675_v21 = vsel %vm369_vm1, %v246_v19, 0  ;;  %v599_v27 = vsel %vm369_vm1, %v245_v26, 0  ;;  %v827_v30 = vsel %vm369_vm1, %v248_v29, 0  ;;  %v250_v35 = vpack.c.bf16 %v234_v34, %v234_v34  ;;  %v235_v43 = vld [vmem:[%s3401_s23 + $0x24] sm:$0xf] }
  0x17   : > { %2826 = vmatprep.subr.bf16.mxu1 %v4807_v0  ;;  %2848 = vmatprep.subr.bf16.mxu0 %v4807_v0  ;;  %v751_v33 = vsel %vm369_vm1, %v247_v32, 0  ;;  %v249_v38 = vpack.c.bf16 %v233_v37, %v233_v37  ;;  %v252_v41 = vpack.c.bf16 %v236_v40, %v236_v40  ;;  %v251_v44 = vpack.c.bf16 %v235_v43, %v235_v43  ;;  %v238_v46 = vld [vmem:[%s3401_s23 + $0x30] sm:$0xf]  ;;  %v237_v49 = vld [vmem:[%s3401_s23 + $0x2c] sm:$0xf] }
  0x18   : > { %v979_v36 = vsel %vm369_vm1, %v250_v35, 0  ;;  %v254_v47 = vpack.c.bf16 %v238_v46, %v238_v46  ;;  %v253_v50 = vpack.c.bf16 %v237_v49, %v237_v49  ;;  %v240_v52 = vld [vmem:[%s3401_s23 + $0x38] sm:$0xf]  ;;  %v239_v8 = vld [vmem:[%s3401_s23 + $0x34] sm:$0xf] }
  0x19   : > { %2811 = vmatmul.mubr.msk.bf16.vlgmr.msra.gmra.mrb[0].mxu1 %vm353_vm2, %v3416_v11  ;;  %2807 = vmatmul.mubr.msk.bf16.vlgmr.msra.gmra.mrb[0].mxu0 %vm353_vm2, %v3421_v12  ;;  %v903_v39 = vsel %vm369_vm1, %v249_v38, 0  ;;  %v1131_v42 = vsel %vm369_vm1, %v252_v41, 0  ;;  %v1055_v45 = vsel %vm369_vm1, %v251_v44, 0  ;;  %v256_v53 = vpack.c.bf16 %v240_v52, %v240_v52 }
  0x1a   : > { %2827 = vmatpush3.bf16.msra.mxu1 %v447_v14  ;;  %2814 = vmatprep.mubr.msk.bf16.mxu1 %vm3349_vm0, %v4807_v0  ;;  %v1283_v48 = vsel %vm369_vm1, %v254_v47, 0  ;;  %v1207_v51 = vsel %vm369_vm1, %v253_v50, 0  ;;  %v255_v9 = vpack.c.bf16 %v239_v8, %v239_v8 }
  0x1b   : > { %2849 = vmatpush3.bf16.msra.mxu0 %v523_v15  ;;  %2850 = vmatprep.mubr.msk.bf16.mxu0 %vm3349_vm0, %v4807_v0  ;;  %v1435_v54 = vsel %vm369_vm1, %v256_v53, 0 }
  0x1c   : > { %2870 = vmatprep.subr.bf16.mxu1 %v4807_v0  ;;  %2892 = vmatprep.subr.bf16.mxu0 %v4807_v0  ;;  %v1359_v19 = vsel %vm369_vm1, %v255_v9, 0 }
  0x1d   : > { %290 = vperm.xlu0 %3315, %v270_v17  }
  0x21   : > { %2815 = vmatmul.mubr.msk.bf16.gmra.mrb[4].mxu1 %vm353_vm2, %v3450_v20  ;;  %2851 = vmatmul.mubr.msk.bf16.vlgmr.msra.gmra.mrb[4].mxu0 %vm353_vm2, %v3421_v12 }
  0x22   : > { %2818 = vmatprep.mubr.msk.bf16.mxu1 %vm3349_vm0, %v4807_v0  ;;  %2854 = vmatprep.mubr.msk.bf16.mxu0 %vm3349_vm0, %v4807_v0 }
  0x23   : > { %2893 = vmatpush3.bf16.msra.mxu0 %v675_v21  ;;  %305 = vperm.xlu0 %3315, %v273_v22  }
  0x24   : > { %2936 = vmatprep.subr.bf16.mxu0 %v4807_v0 }
  0x29   : > { %2819 = vmatmul.mubr.msk.bf16.gmra.mrb[8].mxu1 %vm353_vm2, %v3468_v23  ;;  %2855 = vmatmul.mubr.msk.bf16.gmra.mrb[8].mxu0 %vm353_vm2, %v3416_v11 }
  0x2a   : > { %2822 = vmatprep.mubr.msk.bf16.mxu1 %vm3349_vm0, %v4807_v0  ;;  %2858 = vmatprep.mubr.msk.bf16.mxu0 %vm3349_vm0, %v4807_v0 }
  0x31   : > { %2823 = vmatmul.mubr.msk.bf16.gmra.mrb[12].mxu1 %vm353_vm2, %v3481_v24  ;;  %2859 = vmatmul.mubr.msk.bf16.gmra.mrb[12].mxu0 %vm353_vm2, %v3450_v20 }
  0x32   : > { %2828 = vmatprep.mubr.msk.bf16.mxu1 %vm3349_vm0, %v4807_v0  ;;  %2862 = vmatprep.mubr.msk.bf16.mxu0 %vm3349_vm0, %v4807_v0 }
  0x39   : > { %2829 = vmatmul.mubr.msk.bf16.vlgmr.msra.gmra.mrb[16].mxu1 %vm353_vm2, %v3421_v12  ;;  %2863 = vmatmul.mubr.msk.bf16.gmra.mrb[16].mxu0 %vm353_vm2, %v3468_v23 }
  0x3a   : > { %2871 = vmatpush3.bf16.msra.mxu1 %v599_v27  ;;  %2832 = vmatprep.mubr.msk.bf16.mxu1 %vm3349_vm0, %v4807_v0 }
  0x3b   : > { %2866 = vmatprep.mubr.msk.bf16.mxu0 %vm3349_vm0, %v4807_v0  ;;  %2914 = vmatprep.subr.bf16.mxu1 %v4807_v0 }
  0x41   : > { %2833 = vmatmul.mubr.msk.bf16.gmra.mrb[20].mxu1 %vm353_vm2, %v3416_v11  ;;  %2867 = vmatmul.mubr.msk.bf16.gmra.mrb[20].mxu0 %vm353_vm2, %v3481_v24 }
  0x42   : > { %2836 = vmatprep.mubr.msk.bf16.mxu1 %vm3349_vm0, %v4807_v0  ;;  %2894 = vmatprep.mubr.msk.bf16.mxu0 %vm3349_vm0, %v4807_v0 }
  0x49   : > { %2837 = vmatmul.mubr.msk.bf16.gmra.mrb[24].mxu1 %vm353_vm2, %v3450_v20  ;;  %2895 = vmatmul.mubr.msk.bf16.vlgmr.msra.gmra.mrb[24].mxu0 %vm353_vm2, %v3421_v12 }
  0x4a   : > { %2840 = vmatprep.mubr.msk.bf16.mxu1 %vm3349_vm0, %v4807_v0  ;;  %2898 = vmatprep.mubr.msk.bf16.mxu0 %vm3349_vm0, %v4807_v0 }
  0x4b   : > { %2937 = vmatpush3.bf16.msra.mxu0 %v827_v30 }
  0x4c   : > { %2980 = vmatprep.subr.bf16.mxu0 %v4807_v0 }
  0x51   : > { %2841 = vmatmul.mubr.msk.bf16.gmra.mrb[28].mxu1 %vm353_vm2, %v3468_v23  ;;  %2899 = vmatmul.mubr.msk.bf16.gmra.mrb[28].mxu0 %vm353_vm2, %v3416_v11 }
  0x52   : > { %2844 = vmatprep.mubr.msk.bf16.mxu1 %vm3349_vm0, %v4807_v0  ;;  %2902 = vmatprep.mubr.msk.bf16.mxu0 %vm3349_vm0, %v4807_v0 }
  0x59   : > { %2845 = vmatmul.mubr.msk.bf16.gmra.mrb[32].mxu1 %vm353_vm2, %v3481_v24  ;;  %2903 = vmatmul.mubr.msk.bf16.gmra.mrb[32].mxu0 %vm353_vm2, %v3450_v20 }
  0x5a   : > { %2872 = vmatprep.mubr.msk.bf16.mxu1 %vm3349_vm0, %v4807_v0  ;;  %2906 = vmatprep.mubr.msk.bf16.mxu0 %vm3349_vm0, %v4807_v0 }
  0x61   : > { %2873 = vmatmul.mubr.msk.bf16.vlgmr.msra.gmra.mrb[36].mxu1 %vm353_vm2, %v3421_v12  ;;  %2907 = vmatmul.mubr.msk.bf16.gmra.mrb[36].mxu0 %vm353_vm2, %v3468_v23 }
  0x62   : > { %2915 = vmatpush3.bf16.msra.mxu1 %v751_v33  ;;  %2876 = vmatprep.mubr.msk.bf16.mxu1 %vm3349_vm0, %v4807_v0 }
  0x63   : > { %2910 = vmatprep.mubr.msk.bf16.mxu0 %vm3349_vm0, %v4807_v0  ;;  %2958 = vmatprep.subr.bf16.mxu1 %v4807_v0 }
  0x69   : > { %2877 = vmatmul.mubr.msk.bf16.gmra.mrb[40].mxu1 %vm353_vm2, %v3416_v11  ;;  %2911 = vmatmul.mubr.msk.bf16.gmra.mrb[40].mxu0 %vm353_vm2, %v3481_v24 }
  0x6a   : > { %2880 = vmatprep.mubr.msk.bf16.mxu1 %vm3349_vm0, %v4807_v0  ;;  %2938 = vmatprep.mubr.msk.bf16.mxu0 %vm3349_vm0, %v4807_v0 }
  0x71   : > { %2881 = vmatmul.mubr.msk.bf16.gmra.mrb[44].mxu1 %vm353_vm2, %v3450_v20  ;;  %2939 = vmatmul.mubr.msk.bf16.vlgmr.msra.gmra.mrb[44].mxu0 %vm353_vm2, %v3421_v12 }
  0x72   : > { %2884 = vmatprep.mubr.msk.bf16.mxu1 %vm3349_vm0, %v4807_v0  ;;  %2942 = vmatprep.mubr.msk.bf16.mxu0 %vm3349_vm0, %v4807_v0 }
  0x73   : > { %2981 = vmatpush3.bf16.msra.mxu0 %v979_v36 }
  0x74   : > { %3024 = vmatprep.subr.bf16.mxu0 %v4807_v0 }
  0x79   : > { %2885 = vmatmul.mubr.msk.bf16.gmra.mrb[48].mxu1 %vm353_vm2, %v3468_v23  ;;  %2943 = vmatmul.mubr.msk.bf16.gmra.mrb[48].mxu0 %vm353_vm2, %v3416_v11 }
  0x7a   : > { %2888 = vmatprep.mubr.msk.bf16.mxu1 %vm3349_vm0, %v4807_v0  ;;  %2946 = vmatprep.mubr.msk.bf16.mxu0 %vm3349_vm0, %v4807_v0 }
  0x81   : > { %2889 = vmatmul.mubr.msk.bf16.gmra.mrb[52].mxu1 %vm353_vm2, %v3481_v24  ;;  %2947 = vmatmul.mubr.msk.bf16.gmra.mrb[52].mxu0 %vm353_vm2, %v3450_v20 }
  0x82   : > { %2916 = vmatprep.mubr.msk.bf16.mxu1 %vm3349_vm0, %v4807_v0  ;;  %2950 = vmatprep.mubr.msk.bf16.mxu0 %vm3349_vm0, %v4807_v0 }
  0x89   : > { %2917 = vmatmul.mubr.msk.bf16.vlgmr.msra.gmra.mrb[56].mxu1 %vm353_vm2, %v3421_v12  ;;  %2951 = vmatmul.mubr.msk.bf16.gmra.mrb[56].mxu0 %vm353_vm2, %v3468_v23 }
  0x8a   : > { %2959 = vmatpush3.bf16.msra.mxu1 %v903_v39  ;;  %2920 = vmatprep.mubr.msk.bf16.mxu1 %vm3349_vm0, %v4807_v0 }
  0x8b   : > { %2954 = vmatprep.mubr.msk.bf16.mxu0 %vm3349_vm0, %v4807_v0  ;;  %3002 = vmatprep.subr.bf16.mxu1 %v4807_v0 }
  0x90   : > { %v3749_v22 = vpop.permute.xlu0 %285  ;;  %v3766_v33 = vpop.permute.xlu1 %280 }
  0x91   : > { %2921 = vmatmul.mubr.msk.bf16.gmra.mrb[60].mxu1 %vm353_vm2, %v3416_v11  ;;  %2955 = vmatmul.mubr.msk.bf16.gmra.mrb[60].mxu0 %vm353_vm2, %v3481_v24 }
  0x92   : > { %2924 = vmatprep.mubr.msk.bf16.mxu1 %vm3349_vm0, %v4807_v0  ;;  %2982 = vmatprep.mubr.msk.bf16.mxu0 %vm3349_vm0, %v4807_v0 }
  0x94   : > { %v3772_v34 = vpop.permute.xlu0 %300  ;;  %v3790_v50 = vpop.permute.xlu1 %295 }
  0x99   : > { %2925 = vmatmul.mubr.msk.bf16.gmra.mrb[64].mxu1 %vm353_vm2, %v3450_v20  ;;  %2983 = vmatmul.mubr.msk.bf16.vlgmr.msra.gmra.mrb[64].mxu0 %vm353_vm2, %v3421_v12 }
  0x9a   : > { %2928 = vmatprep.mubr.msk.bf16.mxu1 %vm3349_vm0, %v4807_v0  ;;  %2986 = vmatprep.mubr.msk.bf16.mxu0 %vm3349_vm0, %v4807_v0 }
  0x9b   : > { %3025 = vmatpush3.bf16.msra.mxu0 %v1131_v42 }
  0x9c   : > { %3068 = vmatprep.subr.bf16.mxu0 %v4807_v0  ;;  %v3784_v49 = vpop.permute.xlu0 %290 }
  0xa1   : > { %2929 = vmatmul.mubr.msk.bf16.gmra.mrb[68].mxu1 %vm353_vm2, %v3468_v23  ;;  %2987 = vmatmul.mubr.msk.bf16.gmra.mrb[68].mxu0 %vm353_vm2, %v3416_v11 }
  0xa2   : > { %2932 = vmatprep.mubr.msk.bf16.mxu1 %vm3349_vm0, %v4807_v0  ;;  %2990 = vmatprep.mubr.msk.bf16.mxu0 %vm3349_vm0, %v4807_v0 }
  0xa9   : > { %2933 = vmatmul.mubr.msk.bf16.gmra.mrb[72].mxu1 %vm353_vm2, %v3481_v24  ;;  %2991 = vmatmul.mubr.msk.bf16.gmra.mrb[72].mxu0 %vm353_vm2, %v3450_v20 }
  0xaa   : > { %2960 = vmatprep.mubr.msk.bf16.mxu1 %vm3349_vm0, %v4807_v0  ;;  %2994 = vmatprep.mubr.msk.bf16.mxu0 %vm3349_vm0, %v4807_v0 }
  0xb1   : > { %2961 = vmatmul.mubr.msk.bf16.vlgmr.msra.gmra.mrb[76].mxu1 %vm353_vm2, %v3421_v12  ;;  %2995 = vmatmul.mubr.msk.bf16.gmra.mrb[76].mxu0 %vm353_vm2, %v3468_v23 }
  0xb2   : > { %3003 = vmatpush3.bf16.msra.mxu1 %v1055_v45  ;;  %2964 = vmatprep.mubr.msk.bf16.mxu1 %vm3349_vm0, %v4807_v0 }
  0xb3   : > { %2998 = vmatprep.mubr.msk.bf16.mxu0 %vm3349_vm0, %v4807_v0  ;;  %3046 = vmatprep.subr.bf16.mxu1 %v4807_v0 }
  0xb9   : > { %2965 = vmatmul.mubr.msk.bf16.gmra.mrb[80].mxu1 %vm353_vm2, %v3416_v11  ;;  %2999 = vmatmul.mubr.msk.bf16.gmra.mrb[80].mxu0 %vm353_vm2, %v3481_v24 }
  0xba   : > { %2968 = vmatprep.mubr.msk.bf16.mxu1 %vm3349_vm0, %v4807_v0  ;;  %3026 = vmatprep.mubr.msk.bf16.mxu0 %vm3349_vm0, %v4807_v0 }
  0xc1   : > { %2969 = vmatmul.mubr.msk.bf16.gmra.mrb[84].mxu1 %vm353_vm2, %v3450_v20  ;;  %3027 = vmatmul.mubr.msk.bf16.vlgmr.msra.gmra.mrb[84].mxu0 %vm353_vm2, %v3421_v12 }
  0xc2   : > { %2972 = vmatprep.mubr.msk.bf16.mxu1 %vm3349_vm0, %v4807_v0  ;;  %3030 = vmatprep.mubr.msk.bf16.mxu0 %vm3349_vm0, %v4807_v0 }
  0xc3   : > { %3069 = vmatpush3.bf16.msra.mxu0 %v1283_v48 }
  0xc4   : > { %3112 = vmatprep.subr.bf16.mxu0 %v4807_v0 }
  0xc9   : > { %2973 = vmatmul.mubr.msk.bf16.gmra.mrb[88].mxu1 %vm353_vm2, %v3468_v23  ;;  %3031 = vmatmul.mubr.msk.bf16.gmra.mrb[88].mxu0 %vm353_vm2, %v3416_v11 }
  0xca   : > { %2976 = vmatprep.mubr.msk.bf16.mxu1 %vm3349_vm0, %v4807_v0  ;;  %3034 = vmatprep.mubr.msk.bf16.mxu0 %vm3349_vm0, %v4807_v0 }
  0xd1   : > { %2977 = vmatmul.mubr.msk.bf16.gmra.mrb[92].mxu1 %vm353_vm2, %v3481_v24  ;;  %3035 = vmatmul.mubr.msk.bf16.gmra.mrb[92].mxu0 %vm353_vm2, %v3450_v20 }
  0xd2   : > { %3004 = vmatprep.mubr.msk.bf16.mxu1 %vm3349_vm0, %v4807_v0  ;;  %3038 = vmatprep.mubr.msk.bf16.mxu0 %vm3349_vm0, %v4807_v0 }
  0xd9   : > { %3005 = vmatmul.mubr.msk.bf16.vlgmr.msra.gmra.mrb[96].mxu1 %vm353_vm2, %v3421_v12  ;;  %3039 = vmatmul.mubr.msk.bf16.gmra.mrb[96].mxu0 %vm353_vm2, %v3468_v23 }
  0xda   : > { %3047 = vmatpush3.bf16.msra.mxu1 %v1207_v51  ;;  %3008 = vmatprep.mubr.msk.bf16.mxu1 %vm3349_vm0, %v4807_v0 }
  0xdb   : > { %3042 = vmatprep.mubr.msk.bf16.mxu0 %vm3349_vm0, %v4807_v0  ;;  %3090 = vmatprep.subr.bf16.mxu1 %v4807_v0 }
  0xe1   : > { %3009 = vmatmul.mubr.msk.bf16.gmra.mrb[100].mxu1 %vm353_vm2, %v3416_v11  ;;  %3043 = vmatmul.mubr.msk.bf16.gmra.mrb[100].mxu0 %vm353_vm2, %v3481_v24 }
  0xe2   : > { %3012 = vmatprep.mubr.msk.bf16.mxu1 %vm3349_vm0, %v4807_v0  ;;  %3070 = vmatprep.mubr.msk.bf16.mxu0 %vm3349_vm0, %v4807_v0 }
  0xe9   : > { %3013 = vmatmul.mubr.msk.bf16.gmra.mrb[104].mxu1 %vm353_vm2, %v3450_v20  ;;  %3071 = vmatmul.mubr.msk.bf16.vlgmr.msra.gmra.mrb[104].mxu0 %vm353_vm2, %v3421_v12 }
  0xea   : > { %3016 = vmatprep.mubr.msk.bf16.mxu1 %vm3349_vm0, %v4807_v0  ;;  %3074 = vmatprep.mubr.msk.bf16.mxu0 %vm3349_vm0, %v4807_v0 }
  0xeb   : > { %3113 = vmatpush3.bf16.msra.mxu0 %v1435_v54 }
  0xec   : > { %v3704_v55 = vpop.f32.mrb[0].mxu1  ;;  %v407_v56 = vpop.f32.mrb[0].mxu0  ;;  %3156 = vmatprep.subr.bf16.mxu0 %v4807_v0 }
  0xed   : > { %v2812_v57 = vpop.f32.mrb[1].mxu1  ;;  %v2808_v58 = vpop.f32.mrb[1].mxu0  ;;  %v408_v35 = vadd.f32 %v407_v56, %v3766_v33  ;;  %v3798_v53 = vadd.f32 %v3704_v55, %v3784_v49 }
  0xee   : > { %v3707_v59 = vpop.f32.mrb[2].mxu1  ;;  %v410_v60 = vpop.f32.mrb[2].mxu0 }
  0xef   : > { %v2813_v61 = vpop.f32.mrb[3].mxu1  ;;  %v2809_v62 = vpop.f32.mrb[3].mxu0  ;;  %v411_v40 = vadd.f32 %v410_v60, %v3749_v22 }
  0xf0   : > { %v419_v61 = vadd.f32 %v3707_v59, %v3790_v50 }
  0xf1   : > { %3017 = vmatmul.mubr.msk.bf16.gmra.mrb[108].mxu1 %vm353_vm2, %v3468_v23  ;;  %3075 = vmatmul.mubr.msk.bf16.gmra.mrb[108].mxu0 %vm353_vm2, %v3416_v11 }
  0xf2   : > { %3020 = vmatprep.mubr.msk.bf16.mxu1 %vm3349_vm0, %v4807_v0  ;;  %3078 = vmatprep.mubr.msk.bf16.mxu0 %vm3349_vm0, %v4807_v0 }
  0xf4   : > { %v3717_v63 = vpop.f32.mrb[4].mxu1  ;;  %v3719_v1 = vpop.f32.mrb[4].mxu0 }
  0xf5   : > { %v2816_v2 = vpop.f32.mrb[5].mxu1  ;;  %v2852_v3 = vpop.f32.mrb[5].mxu0  ;;  %v3825_v9 = vadd.f32 %v3717_v63, %v3772_v34 }
  0xf6   : > { %v3721_v4 = vpop.f32.mrb[6].mxu1  ;;  %v3723_v5 = vpop.f32.mrb[6].mxu0 }
  0xf7   : > { %v2817_v6 = vpop.f32.mrb[7].mxu1  ;;  %v2853_v7 = vpop.f32.mrb[7].mxu0 }
  0xf8   : > { %v3816_v7 = vpop.permute.xlu0 %305 }
  0xf9   : > { %3021 = vmatmul.mubr.msk.bf16.gmra.mrb[112].mxu1 %vm353_vm2, %v3481_v24  ;;  %3079 = vmatmul.mubr.msk.bf16.gmra.mrb[112].mxu0 %vm353_vm2, %v3450_v20 }
  0xfa   : > { %3048 = vmatprep.mubr.msk.bf16.mxu1 %vm3349_vm0, %v4807_v0  ;;  %3082 = vmatprep.mubr.msk.bf16.mxu0 %vm3349_vm0, %v4807_v0 }
  0xfc   : > { %v3734_v10 = vpop.f32.mrb[8].mxu1  ;;  %v3736_v13 = vpop.f32.mrb[8].mxu0 }
  0xfd   : > { %4821 = vst [vmem:[#allocation2_spill] sm:$0xff] %v3734_v10  ;;  %v2820_v14 = vpop.f32.mrb[9].mxu1  ;;  %v2856_v15 = vpop.f32.mrb[9].mxu0 }
  0xfe   : > { %v3738_v16 = vpop.f32.mrb[10].mxu1  ;;  %v3740_v17 = vpop.f32.mrb[10].mxu0 }
  0xff   : > { %v2821_v18 = vpop.f32.mrb[11].mxu1  ;;  %v2857_v21 = vpop.f32.mrb[11].mxu0 }
 0x101   : > { %3049 = vmatmul.mubr.msk.bf16.vlgmr.msra.gmra.mrb[116].mxu1 %vm353_vm2, %v3421_v12  ;;  %3083 = vmatmul.mubr.msk.bf16.gmra.mrb[116].mxu0 %vm353_vm2, %v3468_v23 }
 0x102   : > { %3091 = vmatpush3.bf16.msra.mxu1 %v1359_v19  ;;  %3052 = vmatprep.mubr.msk.bf16.mxu1 %vm3349_vm0, %v4807_v0 }
 0x103   : > { %3086 = vmatprep.mubr.msk.bf16.mxu0 %vm3349_vm0, %v4807_v0  ;;  %3134 = vmatprep.subr.bf16.mxu1 %v4807_v0 }
 0x104   : > { %v3754_v25 = vpop.f32.mrb[12].mxu1  ;;  %v3756_v26 = vpop.f32.mrb[12].mxu0 }
 0x105   : > { %4822 = vst [vmem:[#allocation3_spill] sm:$0xff] %v3754_v25  ;;  %v2824_v27 = vpop.f32.mrb[13].mxu1  ;;  %v2860_v28 = vpop.f32.mrb[13].mxu0 }
 0x106   : > { %v3758_v29 = vpop.f32.mrb[14].mxu1  ;;  %v3760_v30 = vpop.f32.mrb[14].mxu0  ;;  %v3834_v27 = vadd.f32 %v3721_v4, %v3816_v7 }
 0x107   : > { %4823 = vst [vmem:[#allocation4_spill] sm:$0xff] %v3758_v29  ;;  %v2825_v31 = vpop.f32.mrb[15].mxu1  ;;  %v2861_v32 = vpop.f32.mrb[15].mxu0 }
 0x109   : > { %3053 = vmatmul.mubr.msk.bf16.gmra.mrb[120].mxu1 %vm353_vm2, %v3416_v11  ;;  %3087 = vmatmul.mubr.msk.bf16.gmra.mrb[120].mxu0 %vm353_vm2, %v3481_v24 }
 0x10a   : > { %3056 = vmatprep.mubr.msk.bf16.mxu1 %vm3349_vm0, %v4807_v0  ;;  %3114 = vmatprep.mubr.msk.bf16.mxu0 %vm3349_vm0, %v4807_v0 }
 0x10c   : > { %v483_v36 = vpop.f32.mrb[16].mxu1  ;;  %v3775_v37 = vpop.f32.mrb[16].mxu0 }
 0x10d   : > { %4824 = vst [vmem:[#allocation5_spill] sm:$0xff] %v3775_v37  ;;  %v484_v38 = vadd.f32 %v483_v36, %v3766_v33  ;;  %v2830_v39 = vpop.f32.mrb[17].mxu1  ;;  %v2864_v41 = vpop.f32.mrb[17].mxu0 }
 0x10e   : > { %v486_v42 = vpop.f32.mrb[18].mxu1  ;;  %v3779_v43 = vpop.f32.mrb[18].mxu0 }
 0x10f   : > { %v1586_v44 = vpack.c.bf16 %v484_v38, %v408_v35  ;;  %v487_v45 = vadd.f32 %v486_v42, %v3749_v22  ;;  %v2831_v46 = vpop.f32.mrb[19].mxu1  ;;  %v2865_v47 = vpop.f32.mrb[19].mxu0  ;;  %v241_v35 = vld [vmem:[%s3401_s23 + $0x3c] sm:$0xf] }
 0x110   : > { %v257_v4 = vpack.c.bf16 %v241_v35, %v241_v35  ;;  %v563_v35 = vadd.f32 %v3723_v5, %v3749_v22 }
 0x111   : > { %v1702_v48 = vpack.c.bf16 %v487_v45, %v411_v40  ;;  %3057 = vmatmul.mubr.msk.bf16.gmra.mrb[124].mxu1 %vm353_vm2, %v3450_v20  ;;  %1602 = vxpose.xlu0.c.b16.start [1/8] (narrow) %v1586_v44, 16 }
 0x112   : > { %3060 = vmatprep.mubr.msk.bf16.mxu1 %vm3349_vm0, %v4807_v0  ;;  %3115 = vmatmul.mubr.msk.bf16.vlgmr.msra.gmra.mrb[124].mxu0 %vm353_vm2, %v3421_v12  ;;  %v1511_v46 = vsel %vm369_vm1, %v257_v4, 0 }
 0x113   : > { %1718 = vxpose.xlu1.c.b16.start [1/8] (narrow) %v1702_v48, 16  ;;  %3118 = vmatprep.mubr.msk.bf16.mxu0 %vm3349_vm0, %v4807_v0 }
 0x114   : > { %v491_v51 = vpop.f32.mrb[20].mxu1  ;;  %v3794_v52 = vpop.f32.mrb[20].mxu0 }
 0x115   : > { %4825 = vst [vmem:[#allocation6_spill] sm:$0xff] %v3794_v52  ;;  %v3801_v54 = vadd.f32 %v491_v51, %v3784_v49  ;;  %v2834_v56 = vpop.f32.mrb[21].mxu1  ;;  %v2868_v57 = vpop.f32.mrb[21].mxu0 }
 0x116   : > { %v494_v58 = vpop.f32.mrb[22].mxu1  ;;  %v3803_v60 = vpop.f32.mrb[22].mxu0 }
 0x117   : > { %4826 = vst [vmem:[#allocation7_spill] sm:$0xff] %v3803_v60  ;;  %v495_v2 = vadd.f32 %v494_v58, %v3790_v50  ;;  %v2835_v3 = vpop.f32.mrb[23].mxu1  ;;  %v2869_v6 = vpop.f32.mrb[23].mxu0 }
 0x118   : > { %v560_v6 = vadd.f32 %v3719_v1, %v3766_v33 }
 0x119   : > { %v1594_v55 = vpack.c.bf16 %v495_v2, %v419_v61  ;;  %3061 = vmatmul.mubr.msk.bf16.gmra.mrb[128].mxu1 %vm353_vm2, %v3468_v23 }
 0x11a   : > { %3064 = vmatprep.mubr.msk.bf16.mxu1 %vm3349_vm0, %v4807_v0  ;;  %3119 = vmatmul.mubr.msk.bf16.gmra.mrb[128].mxu0 %vm353_vm2, %v3416_v11 }
 0x11b   : > { %3157 = vmatpush3.bf16.msra.mxu0 %v1594_v55  ;;  %3122 = vmatprep.mubr.msk.bf16.mxu0 %vm3349_vm0, %v4807_v0 }
 0x11c   : > { %v499_v59 = vpop.f32.mrb[24].mxu1  ;;  %3158 = vmatprep.subr.bf16.mxu0 %v4807_v0  ;;  %v3821_v8 = vpop.f32.mrb[24].mxu0 }
 0x11d   : > { %v3828_v14 = vadd.f32 %v499_v59, %v3772_v34  ;;  %v2838_v15 = vpop.f32.mrb[25].mxu1  ;;  %v2896_v18 = vpop.f32.mrb[25].mxu0 }
 0x11e   : > { %v502_v19 = vpop.f32.mrb[26].mxu1  ;;  %v3830_v21 = vpop.f32.mrb[26].mxu0 }
 0x11f   : > { %v1710_v28 = vpack.c.bf16 %v3828_v14, %v3825_v9  ;;  %v3839_v31 = vadd.f32 %v502_v19, %v3816_v7  ;;  %v2839_v63 = vpop.f32.mrb[27].mxu1  ;;  %v2897_v32 = vpop.f32.mrb[27].mxu0  ;;  %v712_v14 = vadd.f32 %v3821_v8, %v3766_v33 }
 0x121   : > { %3065 = vmatmul.mubr.msk.bf16.gmra.mrb[132].mxu1 %vm353_vm2, %v3481_v24 }
 0x122   : > { %3092 = vmatprep.mubr.msk.bf16.mxu1 %vm3349_vm0, %v4807_v0  ;;  %3123 = vmatmul.mubr.msk.bf16.gmra.mrb[132].mxu0 %vm353_vm2, %v3450_v20 }
 0x123   : > { %3126 = vmatprep.mubr.msk.bf16.mxu0 %vm3349_vm0, %v4807_v0 }
 0x124   : > { %v3852_v38 = vpop.f32.mrb[28].mxu1  ;;  %v3854_v39 = vpop.f32.mrb[28].mxu0 }
 0x125   : > { %4827 = vst [vmem:[#allocation8_spill] sm:$0xff] %v3852_v38  ;;  %v2842_v40 = vpop.f32.mrb[29].mxu1  ;;  %v2900_v41 = vpop.f32.mrb[29].mxu0  ;;  %v3986_v8 = vadd.f32 %v3854_v39, %v3784_v49 }
 0x126   : > { %v3856_v42 = vpop.f32.mrb[30].mxu1  ;;  %v3858_v44 = vpop.f32.mrb[30].mxu0 }
 0x127   : > { %v2843_v45 = vpop.f32.mrb[31].mxu1  ;;  %v2901_v47 = vpop.f32.mrb[31].mxu0 }
 0x129   : > { %3093 = vmatmul.mubr.msk.bf16.vlgmr.msra.gmra.mrb[136].mxu1 %vm353_vm2, %v3421_v12 }
 0x12a   : > { %3135 = vmatpush3.bf16.msra.mxu1 %v1511_v46  ;;  %3096 = vmatprep.mubr.msk.bf16.mxu1 %vm3349_vm0, %v4807_v0  ;;  %v3902_v46 = vadd.f32 %v3736_v13, %v3784_v49 }
 0x12b   : > { %3176 = vmatprep.subr.bf16.mxu1 %v4807_v0  ;;  %3127 = vmatmul.mubr.msk.bf16.gmra.mrb[136].mxu0 %vm353_vm2, %v3468_v23 }
 0x12c   : > { %v3868_v48 = vpop.f32.mrb[32].mxu1  ;;  %v3870_v51 = vpop.f32.mrb[32].mxu0  ;;  %3130 = vmatprep.mubr.msk.bf16.mxu0 %vm3349_vm0, %v4807_v0 }
 0x12d   : > { %4828 = vst [vmem:[#allocation9_spill] sm:$0xff] %v3868_v48  ;;  %v2846_v56 = vpop.f32.mrb[33].mxu1  ;;  %v2904_v57 = vpop.f32.mrb[33].mxu0 }
 0x12e   : > { %v3874_v58 = vpop.f32.mrb[34].mxu1  ;;  %v3876_v61 = vpop.f32.mrb[34].mxu0 }
 0x12f   : > { %4829 = vst [vmem:[#allocation10_spill] sm:$0xff] %v3874_v58  ;;  %v2847_v2 = vpop.f32.mrb[35].mxu1  ;;  %v2905_v3 = vpop.f32.mrb[35].mxu0 }
 0x131   : > { %3097 = vmatmul.mubr.msk.bf16.gmra.mrb[140].mxu1 %vm353_vm2, %v3416_v11 }
 0x132   : > { %3100 = vmatprep.mubr.msk.bf16.mxu1 %vm3349_vm0, %v4807_v0 }
 0x133   : > { %3131 = vmatmul.mubr.msk.bf16.gmra.mrb[140].mxu0 %vm353_vm2, %v3481_v24 }
 0x134   : > { %v635_v55 = vpop.f32.mrb[36].mxu1  ;;  %v3886_v59 = vpop.f32.mrb[36].mxu0  ;;  %3172 = vmatprep.mubr.msk.bf16.mxu0 %vm3349_vm0, %v4807_v0 }
 0x135   : > { %4830 = vst [vmem:[#allocation11_spill] sm:$0xff] %v3886_v59  ;;  %v636_v15 = vadd.f32 %v635_v55, %v3766_v33  ;;  %v2874_v18 = vpop.f32.mrb[37].mxu1  ;;  %v2908_v19 = vpop.f32.mrb[37].mxu0  ;;  %v571_v55 = vadd.f32 %v3740_v17, %v3790_v50 }
 0x136   : > { %v638_v63 = vpop.f32.mrb[38].mxu1  ;;  %v3891_v32 = vpop.f32.mrb[38].mxu0 }
 0x137   : > { %v1587_v1 = vpack.c.bf16 %v636_v15, %v560_v6  ;;  %v639_v4 = vadd.f32 %v638_v63, %v3749_v22  ;;  %v2875_v40 = vpop.f32.mrb[39].mxu1  ;;  %v2909_v41 = vpop.f32.mrb[39].mxu0 }
 0x139   : > { %v1703_v45 = vpack.c.bf16 %v639_v4, %v563_v35  ;;  %3101 = vmatmul.mubr.msk.bf16.gmra.mrb[144].mxu1 %vm353_vm2, %v3450_v20  ;;  %1603 = vxpose.xlu0.c.b16.cont [2/8] (narrow) %v1587_v1, 16  ;;  %v576_v35 = vadd.f32 %v3756_v26, %v3772_v34 }
 0x13a   : > { %3104 = vmatprep.mubr.msk.bf16.mxu1 %vm3349_vm0, %v4807_v0 }
 0x13b   : > { %1719 = vxpose.xlu1.c.b16.cont [2/8] (narrow) %v1703_v45, 16 }
 0x13c   : > { %v643_v47 = vpop.f32.mrb[40].mxu1  ;;  %v3904_v5 = vpop.f32.mrb[40].mxu0 }
 0x13d   : > { %4831 = vst [vmem:[#allocation12_spill] sm:$0xff] %v3904_v5  ;;  %v3907_v56 = vadd.f32 %v643_v47, %v3784_v49  ;;  %v2878_v57 = vpop.f32.mrb[41].mxu1  ;;  %v2912_v2 = vpop.f32.mrb[41].mxu0 }
 0x13e   : > { %v646_v3 = vpop.f32.mrb[42].mxu1  ;;  %v3909_v6 = vpop.f32.mrb[42].mxu0  ;;  %v3930_v57 = vadd.f32 %v3760_v30, %v3816_v7 }
 0x13f   : > { %4832 = vst [vmem:[#allocation13_spill] sm:$0xff] %v3909_v6  ;;  %v647_v13 = vadd.f32 %v646_v3, %v3790_v50  ;;  %v2879_v18 = vpop.f32.mrb[43].mxu1  ;;  %v2913_v19 = vpop.f32.mrb[43].mxu0 }
 0x141   : > { %v1595_v63 = vpack.c.bf16 %v647_v13, %v571_v55  ;;  %3105 = vmatmul.mubr.msk.bf16.gmra.mrb[148].mxu1 %vm353_vm2, %v3468_v23 }
 0x142   : > { %3108 = vmatprep.mubr.msk.bf16.mxu1 %vm3349_vm0, %v4807_v0 }
 0x143   : > { %3159 = vmatpush3.bf16.msra.mxu0 %v1595_v63 }
 0x144   : > { %v651_v1 = vpop.f32.mrb[44].mxu1  ;;  %3160 = vmatprep.subr.bf16.mxu0 %v4807_v0  ;;  %v3923_v17 = vpop.f32.mrb[44].mxu0 }
 0x145   : > { %v652_v4 = vadd.f32 %v651_v1, %v3772_v34  ;;  %v2882_v40 = vpop.f32.mrb[45].mxu1  ;;  %v2940_v41 = vpop.f32.mrb[45].mxu0 }
 0x146   : > { %v654_v45 = vpop.f32.mrb[46].mxu1  ;;  %v3926_v47 = vpop.f32.mrb[46].mxu0 }
 0x147   : > { %v1711_v2 = vpack.c.bf16 %v652_v4, %v576_v35  ;;  %v3933_v26 = vadd.f32 %v654_v45, %v3816_v7  ;;  %v2883_v3 = vpop.f32.mrb[47].mxu1  ;;  %v2941_v55 = vpop.f32.mrb[47].mxu0 }
 0x149   : > { %3109 = vmatmul.mubr.msk.bf16.gmra.mrb[152].mxu1 %vm353_vm2, %v3481_v24 }
 0x14a   : > { %3136 = vmatprep.mubr.msk.bf16.mxu1 %vm3349_vm0, %v4807_v0 }
 0x14c   : > { %v3941_v18 = vpop.f32.mrb[48].mxu1  ;;  %v3943_v19 = vpop.f32.mrb[48].mxu0 }
 0x14d   : > { %4833 = vst [vmem:[#allocation14_spill] sm:$0xff] %v3941_v18  ;;  %v2886_v30 = vpop.f32.mrb[49].mxu1  ;;  %v2944_v63 = vpop.f32.mrb[49].mxu0 }
 0x14e   : > { %v3945_v35 = vpop.f32.mrb[50].mxu1  ;;  %v3947_v1 = vpop.f32.mrb[50].mxu0 }
 0x14f   : > { %v2887_v4 = vpop.f32.mrb[51].mxu1  ;;  %v2945_v40 = vpop.f32.mrb[51].mxu0 }
 0x151   : > { %3137 = vmatmul.mubr.msk.bf16.vlgmr.msra.gmra.mrb[156].mxu1 %vm353_vm2, %v3421_v12 }
 0x152   : > { %3177 = vmatpush3.bf16.msra.mxu1 %v1710_v28  ;;  %3140 = vmatprep.mubr.msk.bf16.mxu1 %vm3349_vm0, %v4807_v0 }
 0x153   : > { %3178 = vmatprep.subr.bf16.mxu1 %v4807_v0 }
 0x154   : > { %v3957_v41 = vpop.f32.mrb[52].mxu1  ;;  %v3959_v45 = vpop.f32.mrb[52].mxu0 }
 0x155   : > { %4834 = vst [vmem:[#allocation15_spill] sm:$0xff] %v3957_v41  ;;  %v2890_v3 = vpop.f32.mrb[53].mxu1  ;;  %v2948_v55 = vpop.f32.mrb[53].mxu0 }
 0x156   : > { %3179 = vmatpush3.bf16.msra.mxu1 %v1711_v2  ;;  %v3961_v30 = vpop.f32.mrb[54].mxu1  ;;  %v3963_v63 = vpop.f32.mrb[54].mxu0 }
 0x157   : > { %4835 = vst [vmem:[#allocation16_spill] sm:$0xff] %v3961_v30  ;;  %v2891_v12 = vpop.f32.mrb[55].mxu1  ;;  %3180 = vmatprep.subr.bf16.mxu1 %v4807_v0  ;;  %v2949_v9 = vpop.f32.mrb[55].mxu0 }
 0x158   : > { %v715_v9 = vadd.f32 %v3830_v21, %v3749_v22 }
 0x159   : > { %3141 = vmatmul.mubr.msk.bf16.gmra.mrb[160].mxu1 %vm353_vm2, %v3416_v11 }
 0x15a   : > { %3144 = vmatprep.mubr.msk.bf16.mxu1 %vm3349_vm0, %v4807_v0 }
 0x15c   : > { %v787_v28 = vpop.f32.mrb[56].mxu1  ;;  %v3972_v4 = vpop.f32.mrb[56].mxu0 }
 0x15d   : > { %4836 = vst [vmem:[#allocation17_spill] sm:$0xff] %v3972_v4  ;;  %v788_v2 = vadd.f32 %v787_v28, %v3766_v33  ;;  %v2918_v40 = vpop.f32.mrb[57].mxu1  ;;  %v2952_v3 = vpop.f32.mrb[57].mxu0 }
 0x15e   : > { %v790_v55 = vpop.f32.mrb[58].mxu1  ;;  %v3975_v12 = vpop.f32.mrb[58].mxu0 }
 0x15f   : > { %v1588_v11 = vpack.c.bf16 %v788_v2, %v712_v14  ;;  %v791_v13 = vadd.f32 %v790_v55, %v3749_v22  ;;  %v2919_v36 = vpop.f32.mrb[59].mxu1  ;;  %v2953_v15 = vpop.f32.mrb[59].mxu0 }
 0x161   : > { %v1704_v62 = vpack.c.bf16 %v791_v13, %v715_v9  ;;  %3145 = vmatmul.mubr.msk.bf16.gmra.mrb[164].mxu1 %vm353_vm2, %v3450_v20  ;;  %1604 = vxpose.xlu0.c.b16.cont [3/8] (narrow) %v1588_v11, 16  ;;  %v723_v20 = vadd.f32 %v3858_v44, %v3790_v50  ;;  %v728_v9 = vadd.f32 %v3870_v51, %v3772_v34 }
 0x162   : > { %3148 = vmatprep.mubr.msk.bf16.mxu1 %vm3349_vm0, %v4807_v0 }
 0x163   : > { %1720 = vxpose.xlu1.c.b16.cont [3/8] (narrow) %v1704_v62, 16 }
 0x164   : > { %v795_v28 = vpop.f32.mrb[60].mxu1  ;;  %v3988_v21 = vpop.f32.mrb[60].mxu0 }
 0x165   : > { %4837 = vst [vmem:[#allocation18_spill] sm:$0xff] %v3988_v21  ;;  %v3991_v14 = vadd.f32 %v795_v28, %v3784_v49  ;;  %v2922_v36 = vpop.f32.mrb[61].mxu1  ;;  %v2956_v15 = vpop.f32.mrb[61].mxu0 }
 0x166   : > { %v798_v13 = vpop.f32.mrb[62].mxu1  ;;  %v3993_v2 = vpop.f32.mrb[62].mxu0 }
 0x167   : > { %4838 = vst [vmem:[#allocation19_spill] sm:$0xff] %v3993_v2  ;;  %v799_v39 = vadd.f32 %v798_v13, %v3790_v50  ;;  %v2923_v62 = vpop.f32.mrb[63].mxu1  ;;  %v2957_v3 = vpop.f32.mrb[63].mxu0 }
 0x169   : > { %v1596_v55 = vpack.c.bf16 %v799_v39, %v723_v20  ;;  %3149 = vmatmul.mubr.msk.bf16.gmra.mrb[168].mxu1 %vm353_vm2, %v3468_v23  ;;  %v4014_v23 = vadd.f32 %v3876_v61, %v3816_v7 }
 0x16a   : > { %3152 = vmatprep.mubr.msk.bf16.mxu1 %vm3349_vm0, %v4807_v0 }
 0x16b   : > { %3161 = vmatpush3.bf16.msra.mxu0 %v1596_v55 }
 0x16c   : > { %v803_v11 = vpop.f32.mrb[64].mxu1  ;;  %3162 = vmatprep.subr.bf16.mxu0 %v4807_v0  ;;  %v4007_v44 = vpop.f32.mrb[64].mxu0 }
 0x16d   : > { %v804_v28 = vadd.f32 %v803_v11, %v3772_v34  ;;  %v2926_v36 = vpop.f32.mrb[65].mxu1  ;;  %v2984_v15 = vpop.f32.mrb[65].mxu0 }
 0x16e   : > { %v806_v13 = vpop.f32.mrb[66].mxu1  ;;  %v4010_v20 = vpop.f32.mrb[66].mxu0 }
 0x16f   : > { %v1712_v39 = vpack.c.bf16 %v804_v28, %v728_v9  ;;  %v4017_v51 = vadd.f32 %v806_v13, %v3816_v7  ;;  %v2927_v62 = vpop.f32.mrb[67].mxu1  ;;  %v2985_v3 = vpop.f32.mrb[67].mxu0 }
 0x171   : > { %3181 = vmatpush3.bf16.msra.mxu1 %v1712_v39 }
 0x172   : > { %3182 = vmatprep.subr.bf16.mxu1 %v4807_v0  ;;  %3153 = vmatmul.mubr.msk.bf16.gmra.mrb[172].mxu1 %vm353_vm2, %v3481_v24 }
 0x173   : > { %3192 = vmatprep.mubr.msk.bf16.mxu1 %vm3349_vm0, %v4807_v0 }
 0x174   : > { %v4026_v61 = vpop.f32.mrb[68].mxu1  ;;  %v4028_v9 = vpop.f32.mrb[68].mxu0 }
 0x175   : > { %4839 = vst [vmem:[#allocation20_spill] sm:$0xff] %v4026_v61  ;;  %v2930_v11 = vpop.f32.mrb[69].mxu1  ;;  %v2988_v28 = vpop.f32.mrb[69].mxu0 }
 0x176   : > { %v4030_v36 = vpop.f32.mrb[70].mxu1  ;;  %v4032_v15 = vpop.f32.mrb[70].mxu0  ;;  %v864_v11 = vadd.f32 %v3923_v17, %v3766_v33  ;;  %v4054_v17 = vadd.f32 %v3943_v19, %v3784_v49 }
 0x177   : > { %v2931_v13 = vpop.f32.mrb[71].mxu1  ;;  %v2989_v39 = vpop.f32.mrb[71].mxu0 }
 0x17c   : > { %v4034_v62 = vpop.f32.mrb[72].mxu1  ;;  %v4036_v3 = vpop.f32.mrb[72].mxu0 }
 0x17d   : > { %4840 = vst [vmem:[#allocation21_spill] sm:$0xff] %v4034_v62  ;;  %v2934_v24 = vpop.f32.mrb[73].mxu1  ;;  %v2992_v55 = vpop.f32.mrb[73].mxu0 }
 0x17e   : > { %v4038_v40 = vpop.f32.mrb[74].mxu1  ;;  %v4040_v0 = vpop.f32.mrb[74].mxu0  ;;  %v867_v55 = vadd.f32 %v3926_v47, %v3749_v22 }
 0x17f   : > { %4841 = vst [vmem:[#allocation22_spill] sm:$0xff] %v4038_v40  ;;  %v2935_v6 = vpop.f32.mrb[75].mxu1  ;;  %v2993_v2 = vpop.f32.mrb[75].mxu0 }
 0x184   : > { %v939_v28 = vpop.f32.mrb[76].mxu1  ;;  %v4044_v58 = vpop.f32.mrb[76].mxu0 }
 0x185   : > { %4842 = vst [vmem:[#allocation23_spill] sm:$0xff] %v4044_v58  ;;  %v940_v13 = vadd.f32 %v939_v28, %v3766_v33  ;;  %v2962_v39 = vpop.f32.mrb[77].mxu1  ;;  %v2996_v30 = vpop.f32.mrb[77].mxu0 }
 0x186   : > { %v942_v29 = vpop.f32.mrb[78].mxu1  ;;  %v4047_v60 = vpop.f32.mrb[78].mxu0 }
 0x187   : > { %v1589_v24 = vpack.c.bf16 %v940_v13, %v864_v11  ;;  %v943_v6 = vadd.f32 %v942_v29, %v3749_v22  ;;  %v2963_v2 = vpop.f32.mrb[79].mxu1  ;;  %v2997_v40 = vpop.f32.mrb[79].mxu0  ;;  %v875_v29 = vadd.f32 %v3947_v1, %v3790_v50 }
 0x188   : > { %v4845_v2 = vmov 0.0  }
 0x189   : > { %v1705_v21 = vpack.c.bf16 %v943_v6, %v867_v55  ;;  %1605 = vxpose.xlu0.c.b16.cont [4/8] (narrow) %v1589_v24, 16  ;;  %v880_v6 = vadd.f32 %v3959_v45, %v3772_v34 }
 0x18b   : > { %1721 = vxpose.xlu1.c.b16.cont [4/8] (narrow) %v1705_v21, 16 }
 0x18c   : > { %v947_v28 = vpop.f32.mrb[80].mxu1  ;;  %v4056_v30 = vpop.f32.mrb[80].mxu0 }
 0x18d   : > { %4843 = vst [vmem:[#allocation24_spill] sm:$0xff] %v4056_v30  ;;  %v4059_v39 = vadd.f32 %v947_v28, %v3784_v49  ;;  %v2966_v62 = vpop.f32.mrb[81].mxu1  ;;  %v3000_v47 = vpop.f32.mrb[81].mxu0 }
 0x18e   : > { %v950_v11 = vpop.f32.mrb[82].mxu1  ;;  %v4061_v13 = vpop.f32.mrb[82].mxu0 }
 0x18f   : > { %4844 = vst [vmem:[#allocation25_spill] sm:$0xff] %v4061_v13  ;;  %v951_v19 = vadd.f32 %v950_v11, %v3790_v50  ;;  %v2967_v21 = vpop.f32.mrb[83].mxu1  ;;  %v3001_v55 = vpop.f32.mrb[83].mxu0  ;;  %v4078_v11 = vadd.f32 %v3963_v63, %v3816_v7 }
 0x191   : > { %v1597_v24 = vpack.c.bf16 %v951_v19, %v875_v29 }
 0x193   : > { %3163 = vmatpush3.bf16.msra.mxu0 %v1597_v24 }
 0x194   : > { %v955_v62 = vpop.f32.mrb[84].mxu1  ;;  %3164 = vmatprep.subr.bf16.mxu0 %v4845_v2  ;;  %v4071_v28 = vpop.f32.mrb[84].mxu0 }
 0x195   : > { %v956_v47 = vadd.f32 %v955_v62, %v3772_v34  ;;  %v2970_v1 = vpop.f32.mrb[85].mxu1  ;;  %v3028_v13 = vpop.f32.mrb[85].mxu0 }
 0x196   : > { %v958_v30 = vpop.f32.mrb[86].mxu1  ;;  %v4074_v40 = vpop.f32.mrb[86].mxu0 }
 0x197   : > { %v1713_v29 = vpack.c.bf16 %v956_v47, %v880_v6  ;;  %v4081_v45 = vadd.f32 %v958_v30, %v3816_v7  ;;  %v2971_v19 = vpop.f32.mrb[87].mxu1  ;;  %v3029_v21 = vpop.f32.mrb[87].mxu0 }
 0x199   : > { %3183 = vmatpush3.bf16.msra.mxu1 %v1713_v29 }
 0x19a   : > { %3184 = vmatprep.subr.bf16.mxu1 %v4845_v2 }
 0x19c   : > { %v4086_v13 = vpop.f32.mrb[88].mxu1  ;;  %v4088_v24 = vpop.f32.mrb[88].mxu0 }
 0x19d   : > { %4846 = vst [vmem:[#allocation26_spill] sm:$0xff] %v4086_v13  ;;  %v2974_v62 = vpop.f32.mrb[89].mxu1  ;;  %v3032_v1 = vpop.f32.mrb[89].mxu0 }
 0x19e   : > { %v4090_v63 = vpop.f32.mrb[90].mxu1  ;;  %v4092_v6 = vpop.f32.mrb[90].mxu0  ;;  %v1016_v62 = vadd.f32 %v4007_v44, %v3766_v33  ;;  %v4114_v44 = vadd.f32 %v4028_v9, %v3784_v49 }
 0x19f   : > { %v2975_v30 = vpop.f32.mrb[91].mxu1  ;;  %v3033_v47 = vpop.f32.mrb[91].mxu0 }
 0x1a4   : > { %v4094_v19 = vpop.f32.mrb[92].mxu1  ;;  %v4096_v21 = vpop.f32.mrb[92].mxu0 }
 0x1a5   : > { %4847 = vst [vmem:[#allocation27_spill] sm:$0xff] %v4094_v19  ;;  %v2978_v55 = vpop.f32.mrb[93].mxu1  ;;  %v3036_v29 = vpop.f32.mrb[93].mxu0 }
 0x1a6   : > { %v4098_v5 = vpop.f32.mrb[94].mxu1  ;;  %v4100_v41 = vpop.f32.mrb[94].mxu0  ;;  %v1019_v55 = vadd.f32 %v4010_v20, %v3749_v22 }
 0x1a7   : > { %4848 = vst [vmem:[#allocation28_spill] sm:$0xff] %v4098_v5  ;;  %v2979_v52 = vpop.f32.mrb[95].mxu1  ;;  %v3037_v48 = vpop.f32.mrb[95].mxu0 }
 0x1ac   : > { %v1091_v1 = vpop.f32.mrb[96].mxu1  ;;  %v4104_v25 = vpop.f32.mrb[96].mxu0 }
 0x1ad   : > { %4849 = vst [vmem:[#allocation29_spill] sm:$0xff] %v4104_v25  ;;  %v1092_v30 = vadd.f32 %v1091_v1, %v3766_v33  ;;  %v3006_v47 = vpop.f32.mrb[97].mxu1  ;;  %v3040_v19 = vpop.f32.mrb[97].mxu0 }
 0x1ae   : > { %v1094_v58 = vpop.f32.mrb[98].mxu1  ;;  %v4107_v13 = vpop.f32.mrb[98].mxu0 }
 0x1af   : > { %4850 = vst [vmem:[#allocation30_spill] sm:$0xff] %v4107_v13  ;;  %v1590_v29 = vpack.c.bf16 %v1092_v30, %v1016_v62  ;;  %v1095_v52 = vadd.f32 %v1094_v58, %v3749_v22  ;;  %v3007_v48 = vpop.f32.mrb[99].mxu1  ;;  %v3041_v5 = vpop.f32.mrb[99].mxu0  ;;  %v1027_v58 = vadd.f32 %v4032_v15, %v3790_v50 }
 0x1b1   : > { %v1706_v4 = vpack.c.bf16 %v1095_v52, %v1019_v55  ;;  %1606 = vxpose.xlu0.c.b16.cont [5/8] (narrow) %v1590_v29, 16  ;;  %v1032_v52 = vadd.f32 %v4036_v3, %v3772_v34 }
 0x1b3   : > { %1722 = vxpose.xlu1.c.b16.cont [5/8] (narrow) %v1706_v4, 16 }
 0x1b4   : > { %v1099_v1 = vpop.f32.mrb[100].mxu1  ;;  %v4116_v19 = vpop.f32.mrb[100].mxu0 }
 0x1b5   : > { %4851 = vst [vmem:[#allocation31_spill] sm:$0xff] %v4116_v19  ;;  %v4119_v47 = vadd.f32 %v1099_v1, %v3784_v49  ;;  %v3010_v25 = vpop.f32.mrb[101].mxu1  ;;  %v3044_v20 = vpop.f32.mrb[101].mxu0 }
 0x1b6   : > { %v1102_v62 = vpop.f32.mrb[102].mxu1  ;;  %v4121_v30 = vpop.f32.mrb[102].mxu0 }
 0x1b7   : > { %4852 = vst [vmem:[#allocation32_spill] sm:$0xff] %v4121_v30  ;;  %v1103_v9 = vadd.f32 %v1102_v62, %v3790_v50  ;;  %v3011_v4 = vpop.f32.mrb[103].mxu1  ;;  %v3045_v55 = vpop.f32.mrb[103].mxu0  ;;  %v4138_v62 = vadd.f32 %v4040_v0, %v3816_v7 }
 0x1b9   : > { %v1598_v29 = vpack.c.bf16 %v1103_v9, %v1027_v58 }
 0x1bb   : > { %3165 = vmatpush3.bf16.msra.mxu0 %v1598_v29 }
 0x1bc   : > { %v1107_v25 = vpop.f32.mrb[104].mxu1  ;;  %3166 = vmatprep.subr.bf16.mxu0 %v4845_v2  ;;  %v4131_v48 = vpop.f32.mrb[104].mxu0 }
 0x1bd   : > { %v1108_v1 = vadd.f32 %v1107_v25, %v3772_v34  ;;  %v3014_v15 = vpop.f32.mrb[105].mxu1  ;;  %v3072_v20 = vpop.f32.mrb[105].mxu0 }
 0x1be   : > { %v1110_v30 = vpop.f32.mrb[106].mxu1  ;;  %v4134_v5 = vpop.f32.mrb[106].mxu0 }
 0x1bf   : > { %v1714_v58 = vpack.c.bf16 %v1108_v1, %v1032_v52  ;;  %v4141_v3 = vadd.f32 %v1110_v30, %v3816_v7  ;;  %v3015_v9 = vpop.f32.mrb[107].mxu1  ;;  %v3073_v4 = vpop.f32.mrb[107].mxu0 }
 0x1c1   : > { %3185 = vmatpush3.bf16.msra.mxu1 %v1714_v58 }
 0x1c2   : > { %3186 = vmatprep.subr.bf16.mxu1 %v4845_v2 }
 0x1c4   : > { %v4146_v29 = vpop.f32.mrb[108].mxu1  ;;  %v4148_v25 = vpop.f32.mrb[108].mxu0 }
 0x1c5   : > { %4853 = vst [vmem:[#allocation33_spill] sm:$0xff] %v4146_v29  ;;  %v3018_v15 = vpop.f32.mrb[109].mxu1  ;;  %v3076_v20 = vpop.f32.mrb[109].mxu0 }
 0x1c6   : > { %v4150_v0 = vpop.f32.mrb[110].mxu1  ;;  %v4152_v52 = vpop.f32.mrb[110].mxu0  ;;  %v1168_v15 = vadd.f32 %v4071_v28, %v3766_v33  ;;  %v4174_v28 = vadd.f32 %v4088_v24, %v3784_v49 }
 0x1c7   : > { %4854 = vst [vmem:[#allocation34_spill] sm:$0xff] %v4150_v0  ;;  %v3019_v30 = vpop.f32.mrb[111].mxu1  ;;  %v3077_v1 = vpop.f32.mrb[111].mxu0 }
 0x1cc   : > { %v4154_v9 = vpop.f32.mrb[112].mxu1  ;;  %v4156_v4 = vpop.f32.mrb[112].mxu0 }
 0x1cd   : > { %4855 = vst [vmem:[#allocation35_spill] sm:$0xff] %v4154_v9  ;;  %v3022_v55 = vpop.f32.mrb[113].mxu1  ;;  %v3080_v58 = vpop.f32.mrb[113].mxu0 }
 0x1ce   : > { %v4158_v19 = vpop.f32.mrb[114].mxu1  ;;  %v4160_v61 = vpop.f32.mrb[114].mxu0  ;;  %v1171_v55 = vadd.f32 %v4074_v40, %v3749_v22 }
 0x1cf   : > { %4856 = vst [vmem:[#allocation36_spill] sm:$0xff] %v4158_v19  ;;  %v3023_v29 = vpop.f32.mrb[115].mxu1  ;;  %v3081_v59 = vpop.f32.mrb[115].mxu0 }
 0x1d4   : > { %v1243_v20 = vpop.f32.mrb[116].mxu1  ;;  %v4164_v18 = vpop.f32.mrb[116].mxu0 }
 0x1d5   : > { %4857 = vst [vmem:[#allocation37_spill] sm:$0xff] %v4164_v18  ;;  %v1244_v30 = vadd.f32 %v1243_v20, %v3766_v33  ;;  %v3050_v1 = vpop.f32.mrb[117].mxu1  ;;  %v3084_v9 = vpop.f32.mrb[117].mxu0 }
 0x1d6   : > { %v1246_v37 = vpop.f32.mrb[118].mxu1  ;;  %v4167_v38 = vpop.f32.mrb[118].mxu0 }
 0x1d7   : > { %4858 = vst [vmem:[#allocation38_spill] sm:$0xff] %v4167_v38  ;;  %v1591_v58 = vpack.c.bf16 %v1244_v30, %v1168_v15  ;;  %v1247_v29 = vadd.f32 %v1246_v37, %v3749_v22  ;;  %v3051_v59 = vpop.f32.mrb[119].mxu1  ;;  %v3085_v19 = vpop.f32.mrb[119].mxu0  ;;  %v1179_v37 = vadd.f32 %v4092_v6, %v3790_v50 }
 0x1d9   : > { %v1707_v10 = vpack.c.bf16 %v1247_v29, %v1171_v55  ;;  %1607 = vxpose.xlu0.c.b16.cont [6/8] (narrow) %v1591_v58, 16  ;;  %v1184_v29 = vadd.f32 %v4096_v21, %v3772_v34 }
 0x1db   : > { %1723 = vxpose.xlu1.c.b16.cont [6/8] (narrow) %v1707_v10, 16 }
 0x1dc   : > { %v1251_v20 = vpop.f32.mrb[120].mxu1  ;;  %v4176_v9 = vpop.f32.mrb[120].mxu0 }
 0x1dd   : > { %4859 = vst [vmem:[#allocation39_spill] sm:$0xff] %v4176_v9  ;;  %v4179_v1 = vadd.f32 %v1251_v20, %v3784_v49  ;;  %v3054_v18 = vpop.f32.mrb[121].mxu1  ;;  %v3088_v40 = vpop.f32.mrb[121].mxu0 }
 0x1de   : > { %v1254_v15 = vpop.f32.mrb[122].mxu1  ;;  %v4181_v30 = vpop.f32.mrb[122].mxu0 }
 0x1df   : > { %4860 = vst [vmem:[#allocation40_spill] sm:$0xff] %v4181_v30  ;;  %v1255_v24 = vadd.f32 %v1254_v15, %v3790_v50  ;;  %v3055_v10 = vpop.f32.mrb[123].mxu1  ;;  %v3089_v55 = vpop.f32.mrb[123].mxu0  ;;  %v4196_v15 = vadd.f32 %v4100_v41, %v3816_v7 }
 0x1e1   : > { %v1599_v58 = vpack.c.bf16 %v1255_v24, %v1179_v37 }
 0x1e3   : > { %3167 = vmatpush3.bf16.msra.mxu0 %v1599_v58 }
 0x1e4   : > { %v1259_v18 = vpop.f32.mrb[124].mxu1  ;;  %3168 = vmatprep.subr.bf16.mxu0 %v4845_v2 }
 0x1e5   : > { %v1260_v59 = vadd.f32 %v1259_v18, %v3772_v34  ;;  %v3058_v20 = vpop.f32.mrb[125].mxu1  ;;  %v4192_v40 = vpop.f32.mrb[124].mxu0 }
 0x1e6   : > { %v1262_v6 = vpop.f32.mrb[126].mxu1  ;;  %v3116_v30 = vpop.f32.mrb[125].mxu0 }
 0x1e7   : > { %v1715_v10 = vpack.c.bf16 %v1260_v59, %v1184_v29  ;;  %v4199_v37 = vadd.f32 %v1262_v6, %v3816_v7  ;;  %v3059_v21 = vpop.f32.mrb[127].mxu1  ;;  %v4201_v24 = vpop.f32.mrb[126].mxu0 }
 0x1e8   : > { %v3117_v55 = vpop.f32.mrb[127].mxu0 }
 0x1e9   : > { %3187 = vmatpush3.bf16.msra.mxu1 %v1715_v10 }
 0x1ea   : > { %3188 = vmatprep.subr.bf16.mxu1 %v4845_v2 }
 0x1ec   : > { %v4206_v18 = vpop.f32.mrb[128].mxu1 }
 0x1ed   : > { %4861 = vst [vmem:[#allocation41_spill] sm:$0xff] %v4206_v18  ;;  %v3062_v30 = vpop.f32.mrb[129].mxu1  ;;  %v4208_v20 = vpop.f32.mrb[128].mxu0 }
 0x1ee   : > { %v4210_v41 = vpop.f32.mrb[130].mxu1  ;;  %v3120_v29 = vpop.f32.mrb[129].mxu0 }
 0x1ef   : > { %4862 = vst [vmem:[#allocation42_spill] sm:$0xff] %v4210_v41  ;;  %v3063_v59 = vpop.f32.mrb[131].mxu1  ;;  %v4212_v6 = vpop.f32.mrb[130].mxu0  ;;  %v1320_v41 = vadd.f32 %v4131_v48, %v3766_v33 }
 0x1f0   : > { %v3121_v21 = vpop.f32.mrb[131].mxu0 }
 0x1f4   : > { %v4214_v19 = vpop.f32.mrb[132].mxu1 }
 0x1f5   : > { %4863 = vst [vmem:[#allocation43_spill] sm:$0xff] %v4214_v19  ;;  %v3066_v55 = vpop.f32.mrb[133].mxu1  ;;  %v4216_v9 = vpop.f32.mrb[132].mxu0 }
 0x1f6   : > { %v4218_v10 = vpop.f32.mrb[134].mxu1  ;;  %v3124_v58 = vpop.f32.mrb[133].mxu0  ;;  %v1323_v55 = vadd.f32 %v4134_v5, %v3749_v22  ;;  %v1331_v5 = vadd.f32 %v4152_v52, %v3790_v50  ;;  %v4246_v52 = vadd.f32 %v4160_v61, %v3816_v7 }
 0x1f7   : > { %4864 = vst [vmem:[#allocation44_spill] sm:$0xff] %v4218_v10  ;;  %v3067_v38 = vpop.f32.mrb[135].mxu1  ;;  %v4220_v18 = vpop.f32.mrb[134].mxu0 }
 0x1f8   : > { %v3125_v30 = vpop.f32.mrb[135].mxu0  ;;  %v4230_v38 = vadd.f32 %v4148_v25, %v3784_v49 }
 0x1fc   : > { %v1395_v29 = vpop.f32.mrb[136].mxu1 }
 0x1fd   : > { %v1396_v59 = vadd.f32 %v1395_v29, %v3766_v33  ;;  %v3094_v13 = vpop.f32.mrb[137].mxu1 }
 0x1fe   : > { %v1398_v21 = vpop.f32.mrb[138].mxu1 }
 0x1ff   : > { %v1592_v19 = vpack.c.bf16 %v1396_v59, %v1320_v41  ;;  %v1399_v0 = vadd.f32 %v1398_v21, %v3749_v22  ;;  %v3095_v10 = vpop.f32.mrb[139].mxu1  ;;  %v1336_v59 = vadd.f32 %v4156_v4, %v3772_v34 }
 0x201   : > { %v1708_v58 = vpack.c.bf16 %v1399_v0, %v1323_v55  ;;  %1608 = vxpose.xlu0.c.b16.cont [7/8] (narrow) %v1592_v19, 16 }
 0x203   : > { %1724 = vxpose.xlu1.c.b16.cont [7/8] (narrow) %v1708_v58, 16 }
 0x204   : > { %v1403_v48 = vpop.f32.mrb[140].mxu1 }
 0x205   : > { %v4233_v30 = vadd.f32 %v1403_v48, %v3784_v49  ;;  %v3098_v13 = vpop.f32.mrb[141].mxu1 }
 0x206   : > { %v1406_v29 = vpop.f32.mrb[142].mxu1 }
 0x207   : > { %v1407_v0 = vadd.f32 %v1406_v29, %v3790_v50  ;;  %v3099_v19 = vpop.f32.mrb[143].mxu1 }
 0x209   : > { %v1600_v10 = vpack.c.bf16 %v1407_v0, %v1331_v5 }
 0x20b   : > { %3169 = vmatpush3.bf16.msra.mxu0 %v1600_v10  ;;  %v4258_v10 = vpop.f32.mrb[136].mxu0 }
 0x20c   : > { %v1411_v25 = vpop.f32.mrb[144].mxu1  ;;  %3170 = vmatprep.subr.bf16.mxu0 %v4845_v2  ;;  %4866 = vst [vmem:[#allocation46_spill] sm:$0xff] %v4258_v10 }
 0x20d   : > { %v1412_v21 = vadd.f32 %v1411_v25, %v3772_v34  ;;  %v3102_v55 = vpop.f32.mrb[145].mxu1  ;;  %v3128_v25 = vpop.f32.mrb[137].mxu0 }
 0x20e   : > { %v1414_v58 = vpop.f32.mrb[146].mxu1 }
 0x20f   : > { %v1716_v48 = vpack.c.bf16 %v1412_v21, %v1336_v59  ;;  %v4249_v13 = vadd.f32 %v1414_v58, %v3816_v7  ;;  %v3103_v29 = vpop.f32.mrb[147].mxu1 }
 0x211   : > { %3189 = vmatpush3.bf16.msra.mxu1 %v1716_v48  ;;  %v1472_v48 = vadd.f32 %v4192_v40, %v3766_v33 }
 0x212   : > { %3190 = vmatprep.subr.bf16.mxu1 %v4845_v2 }
 0x214   : > { %v4254_v4 = vpop.f32.mrb[148].mxu1 }
 0x215   : > { %4865 = vst [vmem:[#allocation45_spill] sm:$0xff] %v4254_v4  ;;  %v3106_v0 = vpop.f32.mrb[149].mxu1  ;;  %v1475_v4 = vadd.f32 %v4201_v24, %v3749_v22 }
 0x216   : > { %v4256_v19 = vpop.f32.mrb[150].mxu1 }
 0x217   : > { %v3107_v61 = vpop.f32.mrb[151].mxu1 }
 0x21c   : > { %v4260_v59 = vpop.f32.mrb[152].mxu1 }
 0x21d   : > { %4867 = vst [vmem:[#allocation47_spill] sm:$0xff] %v4260_v59  ;;  %v3110_v21 = vpop.f32.mrb[153].mxu1 }
 0x21e   : > { %v4262_v55 = vpop.f32.mrb[154].mxu1 }
 0x21f   : > { %4868 = vst [vmem:[#allocation48_spill] sm:$0xff] %v4262_v55  ;;  %v3111_v58 = vpop.f32.mrb[155].mxu1 }
 0x220   : > { %v1480_v58 = vadd.f32 %v4208_v20, %v3784_v49 }
 0x224   : > { %v1547_v29 = vpop.f32.mrb[156].mxu1 }
 0x225   : > { %v1548_v5 = vadd.f32 %v1547_v29, %v3766_v33  ;;  %v3138_v41 = vpop.f32.mrb[157].mxu1 }
 0x226   : > { %v1550_v0 = vpop.f32.mrb[158].mxu1  ;;  %v1483_v41 = vadd.f32 %v4212_v6, %v3790_v50  ;;  %v4870_v6 = vpack.c.bf16 %v3907_v56, %v3902_v46 }
 0x227   : > { %v1593_v10 = vpack.c.bf16 %v1548_v5, %v1472_v48  ;;  %v1551_v61 = vadd.f32 %v1550_v0, %v3749_v22  ;;  %v3139_v25 = vpop.f32.mrb[159].mxu1  ;;  %v4869_v22 = vpack.c.bf16 %v3801_v54, %v3798_v53  ;;  %v275_v5 = vld [vmem:[%s4804_s3 + $0x38] sm:$0xff]  ;;  %v1488_v54 = vadd.f32 %v4216_v9, %v3772_v34  ;;  %v276_v9 = vld [vmem:[%s4804_s3 + $0x40] sm:$0xff] }
 0x228   : > { %v4295_v0 = vadd.f32 %v4220_v18, %v3816_v7  ;;  %v4872_v18 = vpack.c.bf16 %v4059_v39, %v4054_v17  ;;  %v2329_v17 = vld [vmem:[%s4805_s4] sm:$0xff] }
 0x229   : > { %v1709_v59 = vpack.c.bf16 %v1551_v61, %v1475_v4  ;;  %1609 = vxpose.xlu0.c.b16.end [8/8] (narrow) %v1593_v10, 16  ;;  %v4282_v10 = vpop.f32.mrb[138].mxu0  ;;  %v4871_v61 = vpack.c.bf16 %v3991_v14, %v3986_v8  ;;  %v277_v8 = vld [vmem:[%s4804_s3 + $0x48] sm:$0xff] }
 0x22b   : > { %1725 = vxpose.xlu1.c.b16.end [8/8] (narrow) %v1709_v59, 16 }
 0x22c   : > { %v1555_v21 = vpop.f32.mrb[160].mxu1 }
 0x22d   : > { %v1556_v40 = vadd.f32 %v1555_v21, %v3784_v49  ;;  %v3142_v55 = vpop.f32.mrb[161].mxu1  ;;  %v3129_v49 = vpop.f32.mrb[139].mxu0 }
 0x22e   : > { %v1558_v33 = vpop.f32.mrb[162].mxu1  ;;  %v4308_v21 = vpop.f32.mrb[140].mxu0 }
 0x22f   : > { %v2067_v29 = vpack.c.bf16 %v1556_v40, %v1480_v58  ;;  %v1559_v24 = vadd.f32 %v1558_v33, %v3790_v50  ;;  %2076 = vxpose.xlu1.c.b16.start [1/8] (narrow) %v4869_v22, 16  ;;  %v3143_v4 = vpop.f32.mrb[163].mxu1  ;;  %v274_v50 = vld [vmem:[%s4804_s3 + $0x30] sm:$0xff]  ;;  %v4875_v22 = vpack.c.bf16 %v4179_v1, %v4174_v28  ;;  %v2333_v1 = vld [vmem:[%s4805_s4 + $0x20] sm:$0xff] }
 0x231   : > { %v1601_v20 = vpack.c.bf16 %v1559_v24, %v1483_v41  ;;  %v4874_v24 = vpack.c.bf16 %v4119_v47, %v4114_v44  ;;  %v4876_v44 = vpack.c.bf16 %v4233_v30, %v4230_v38  ;;  %v2331_v47 = vld [vmem:[%s4805_s4 + $0x10] sm:$0xff]  ;;  %v2334_v30 = vld [vmem:[%s4805_s4 + $0x28] sm:$0xff] }
 0x232   : > { %315 = vperm.xlu0 %3315, %v275_v5   ;;  %v2330_v5 = vld [vmem:[%s4805_s4 + $0x8] sm:$0xff]  ;;  %v2335_v38 = vld [vmem:[%s4805_s4 + $0x30] sm:$0xff] }
 0x233   : > { %2077 = vxpose.xlu1.c.b16.cont [2/8] (narrow) %v4870_v6, 16  ;;  %3171 = vmatpush3.bf16.msra.mxu0 %v1601_v20  ;;  %v2332_v6 = vld [vmem:[%s4805_s4 + $0x18] sm:$0xff] }
 0x234   : > { %v1563_v53 = vpop.f32.mrb[164].mxu1 }
 0x235   : > { %v1564_v59 = vadd.f32 %v1563_v53, %v3772_v34  ;;  %v3146_v55 = vpop.f32.mrb[165].mxu1  ;;  %v2339_v53 = vld [vmem:[%s4805_s4 + $0x50] sm:$0xff] }
 0x236   : > { %v1566_v48 = vpop.f32.mrb[166].mxu1  ;;  %310 = vperm.xlu0 %3315, %v274_v50   ;;  %v2336_v50 = vld [vmem:[%s4805_s4 + $0x38] sm:$0xff] }
 0x237   : > { %v1717_v46 = vpack.c.bf16 %v1564_v59, %v1488_v54  ;;  %v4298_v56 = vadd.f32 %v1566_v48, %v3816_v7  ;;  %2078 = vxpose.xlu1.c.b16.cont [3/8] (narrow) %v4871_v61, 16  ;;  %v3147_v34 = vpop.f32.mrb[167].mxu1  ;;  %v3132_v7 = vpop.f32.mrb[141].mxu0  ;;  %v2338_v54 = vld [vmem:[%s4805_s4 + $0x48] sm:$0xff]  ;;  %v2341_v59 = vld [vmem:[%s4805_s4 + $0x60] sm:$0xff]  ;;  %v2340_v55 = vld [vmem:[%s4805_s4 + $0x58] sm:$0xff] }
 0x238   : > { %v4319_v40 = vpop.f32.mrb[142].mxu0  ;;  %v2343_v48 = vld [vmem:[%s4805_s4 + $0x70] sm:$0xff]  ;;  %v2344_v61 = vld [vmem:[%s4805_s4 + $0x78] sm:$0xff]  ;;  %v4878_v7 = vpack.c.bf16 %v3839_v31, %v3834_v27  ;;  %v4881_v27 = vpack.c.bf16 %v4081_v45, %v4078_v11  ;;  %v4882_v31 = vpack.c.bf16 %v4141_v3, %v4138_v62 }
 0x239   : > { %v2075_v25 = vpack.c.bf16 %v4298_v56, %v4295_v0  ;;  %3191 = vmatpush3.bf16.msra.mxu1 %v1717_v46  ;;  %4873 = vst [vmem:[#allocation49_spill] sm:$0xff] %v4319_v40  ;;  %v3133_v41 = vpop.f32.mrb[143].mxu0  ;;  %v2342_v46 = vld [vmem:[%s4805_s4 + $0x68] sm:$0xff]  ;;  %v4885_v0 = vld [vmem:[#allocation34_spill] sm:$0xff] }
 0x23a   : > { %320 = vperm.xlu0 %3315, %v276_v9   ;;  %3232 = vmatprep.subr.bf16.mxu1 %v4845_v2  ;;  %v4888_v41 = vld [vmem:[#allocation38_spill] sm:$0xff] }
 0x23b   : > { %2079 = vxpose.xlu1.c.b16.cont [4/8] (narrow) %v4872_v18, 16  ;;  %v4879_v18 = vpack.c.bf16 %v3933_v26, %v3930_v57  ;;  %v4883_v57 = vpack.c.bf16 %v4199_v37, %v4196_v15  ;;  %v4884_v26 = vpack.c.bf16 %v4249_v13, %v4246_v52 }
 0x23c   : > { %v4317_v14 = vpop.f32.mrb[168].mxu1 }
 0x23d   : > { %v3150_v58 = vpop.f32.mrb[169].mxu1 }
 0x23e   : > { %325 = vperm.xlu0 %3315, %v277_v8   ;;  %v4321_v33 = vpop.f32.mrb[170].mxu1  ;;  %v4880_v8 = vpack.c.bf16 %v4017_v51, %v4014_v23  ;;  %v4887_v58 = vld [vmem:[#allocation42_spill] sm:$0xff] }
 0x23f   : > { %2080 = vxpose.xlu1.c.b16.cont [5/8] (narrow) %v4874_v24, 16  ;;  %v3151_v39 = vpop.f32.mrb[171].mxu1 }
 0x240   : > { %v4889_v39 = vld [vmem:[#allocation2_spill] sm:$0xff] }
 0x242   : > { %2347 = vperm.xlu0 %3315, %v2329_v17  }
 0x243   : > { %2081 = vxpose.xlu1.c.b16.cont [6/8] (narrow) %v4875_v22, 16 }
 0x245   : > { %v4335_v4 = vpop.f32.mrb[172].mxu1 }
 0x246   : > { %2352 = vperm.xlu0 %3315, %v2330_v5   ;;  %v3154_v20 = vpop.f32.mrb[173].mxu1  ;;  %v4890_v5 = vld [vmem:[#allocation8_spill] sm:$0xff] }
 0x247   : > { %2082 = vxpose.xlu1.c.b16.cont [7/8] (narrow) %v4876_v44, 16  ;;  %v4343_v49 = vpop.f32.mrb[174].mxu1 }
 0x248   : > { %4877 = vst [vmem:[#allocation50_spill] sm:$0xff] %v4343_v49  ;;  %v3155_v28 = vpop.f32.mrb[175].mxu1 }
 0x24a   : > { %2357 = vperm.xlu0 %3315, %v2331_v47   ;;  %v4891_v47 = vld [vmem:[#allocation5_spill] sm:$0xff] }
 0x24b   : > { %2083 = vxpose.xlu1.c.b16.end [8/8] (narrow) %v2067_v29, 16  ;;  %v2337_v29 = vld [vmem:[%s4805_s4 + $0x40] sm:$0xff] }
 0x24e   : > { %2367 = vperm.xlu0 %3315, %v2333_v1   ;;  %v4892_v1 = vld [vmem:[#allocation14_spill] sm:$0xff] }
 0x24f   : > { %2362 = vperm.xlu1 %3316, %v2332_v6  }
 0x252   : > { %2377 = vperm.xlu0 %3315, %v2335_v38   ;;  %v4893_v38 = vld [vmem:[#allocation11_spill] sm:$0xff] }
 0x253   : > { %2372 = vperm.xlu1 %3316, %v2334_v30  }
 0x256   : > { %2387 = vperm.xlu0 %3315, %v2337_v29  }
 0x257   : > { %2382 = vperm.xlu1 %3316, %v2336_v50  }
 0x25a   : > { %2397 = vperm.xlu0 %3315, %v2339_v53   ;;  %v4894_v53 = vld [vmem:[#allocation20_spill] sm:$0xff] }
 0x25b   : > { %2392 = vperm.xlu1 %3316, %v2338_v54  }
 0x25e   : > { %2407 = vperm.xlu0 %3315, %v2341_v59   ;;  %v4895_v59 = vld [vmem:[#allocation17_spill] sm:$0xff] }
 0x25f   : > { %2402 = vperm.xlu1 %3316, %v2340_v55  }
 0x262   : > { %2417 = vperm.xlu0 %3315, %v2343_v48  }
 0x263   : > { %2412 = vperm.xlu1 %3316, %v2342_v46  }
 0x267   : > { %2422 = vperm.xlu1 %3316, %v2344_v61  }
 0x273   : > { %v1610_v9 = vpop.trf.xlu0 }
 0x274   : > { %3173 = vmatmul.mubr.bf16.vlgmr.msra.gmra.mrb[144].mxu0 %v1610_v9  ;;  %v4898_v9 = vld [vmem:[#allocation26_spill] sm:$0xff] }
 0x275   : > { %v1726_v34 = vpop.trf.xlu1 }
 0x276   : > { %3193 = vmatmul.mubr.bf16.vlgmr.msra.gmra.mrb[176].mxu1 %v1726_v34 }
 0x277   : > { %3233 = vmatpush3.bf16.msra.mxu1 %v4878_v7  ;;  %3248 = vmatprep.mubr.msk.bf16.mxu1 %vm3349_vm0, %v4845_v2  ;;  %v4926_v7 = vld [vmem:[#allocation39_spill] sm:$0xff] }
 0x278   : > { %3234 = vmatprep.subr.bf16.mxu1 %v4845_v2 }
 0x27b   : > { %3235 = vmatpush3.bf16.msra.mxu1 %v4879_v18  ;;  %v4899_v18 = vld [vmem:[#allocation23_spill] sm:$0xff] }
 0x27c   : > { %3236 = vmatprep.subr.bf16.mxu1 %v4845_v2 }
 0x27f   : > { %3237 = vmatpush3.bf16.msra.mxu1 %v4880_v8 }
 0x280   : > { %3238 = vmatprep.subr.bf16.mxu1 %v4845_v2 }
 0x283   : > { %3239 = vmatpush3.bf16.msra.mxu1 %v4881_v27  ;;  %v4900_v27 = vld [vmem:[#allocation33_spill] sm:$0xff] }
 0x284   : > { %3240 = vmatprep.subr.bf16.mxu1 %v4845_v2 }
 0x287   : > { %3241 = vmatpush3.bf16.msra.mxu1 %v4882_v31 }
 0x288   : > { %3242 = vmatprep.subr.bf16.mxu1 %v4845_v2 }
 0x28b   : > { %3243 = vmatpush3.bf16.msra.mxu1 %v4883_v57 }
 0x28c   : > { %3244 = vmatprep.subr.bf16.mxu1 %v4845_v2 }
 0x28f   : > { %3245 = vmatpush3.bf16.msra.mxu1 %v4884_v26 }
 0x290   : > { %3246 = vmatprep.subr.bf16.mxu1 %v4845_v2 }
 0x293   : > { %3247 = vmatpush3.bf16.msra.mxu1 %v2075_v25 }
 0x295   : > { %v2084_v23 = vpop.trf.xlu1 }
 0x296   : > { %3249 = vmatmul.mubr.bf16.vlgmr.msra.gmra.mrb[180].mxu1 %v2084_v23  ;;  %v4902_v23 = vld [vmem:[#allocation41_spill] sm:$0xff] }
 0x2b1   : > { %v316_v51 = vpop.permute.xlu0 %315 }
 0x2b2   : > { %v4418_v11 = vadd.f32 %v4282_v10, %v316_v51  ;;  %v4421_v45 = vadd.f32 %v4321_v33, %v316_v51  ;;  %v435_v62 = vadd.f32 %v3738_v16, %v316_v51  ;;  %v511_v3 = vadd.f32 %v3856_v42, %v316_v51 }
 0x2b3   : > { %v4426_v2 = vadd.f32 %v3779_v43, %v316_v51  ;;  %v4429_v15 = vadd.f32 %v3945_v35, %v316_v51  ;;  %v4432_v37 = vadd.f32 %v3891_v32, %v316_v51  ;;  %v4435_v52 = vadd.f32 %v4030_v36, %v316_v51 }
 0x2b4   : > { %v1810_v10 = vpack.c.bf16 %v511_v3, %v435_v62  ;;  %v4440_v16 = vadd.f32 %v3975_v12, %v316_v51  ;;  %v4443_v42 = vadd.f32 %v4090_v63, %v316_v51  ;;  %v4450_v36 = vadd.f32 %v4047_v60, %v316_v51  ;;  %v4886_v63 = vld [vmem:[#allocation30_spill] sm:$0xff]  ;;  %v4903_v62 = vld [vmem:[#allocation37_spill] sm:$0xff] }
 0x2b5   : > { %v311_v43 = vpop.permute.xlu0 %310  ;;  %v4453_v56 = vadd.f32 %v4885_v0, %v316_v51  ;;  %v4459_v25 = vadd.f32 %v4886_v63, %v316_v51  ;;  %v4462_v33 = vadd.f32 %v4887_v58, %v316_v51  ;;  %v4465_v24 = vadd.f32 %v4888_v41, %v316_v51  ;;  %v4904_v0 = vld [vmem:[#allocation45_spill] sm:$0xff]  ;;  %v4905_v58 = vld [vmem:[#allocation46_spill] sm:$0xff] }
 0x2b6   : > { %3198 = vmatprep.mubr.msk.bf16.mxu0 %vm1661_vm3, %v1810_v10  ;;  %v4470_v17 = vadd.f32 %v4256_v19, %v316_v51  ;;  %v4473_v22 = vadd.f32 %v4889_v39, %v311_v43  ;;  %v4476_v20 = vadd.f32 %v4890_v5, %v311_v43  ;;  %v4481_v28 = vadd.f32 %v4891_v47, %v311_v43  ;;  %v4906_v47 = vld [vmem:[#allocation3_spill] sm:$0xff] }
 0x2b7   : > { %v4484_v6 = vadd.f32 %v4892_v1, %v311_v43  ;;  %v4487_v30 = vadd.f32 %v4893_v38, %v311_v43  ;;  %v4494_v54 = vadd.f32 %v4894_v53, %v311_v43  ;;  %v4497_v55 = vadd.f32 %v4895_v59, %v311_v43  ;;  %v4907_v38 = vld [vmem:[#allocation9_spill] sm:$0xff]  ;;  %v4920_v5 = vld [vmem:[#allocation35_spill] sm:$0xff] }
 0x2b8   : > { %v4508_v34 = vadd.f32 %v4898_v9, %v311_v43  ;;  %v4513_v8 = vadd.f32 %v4899_v18, %v311_v43  ;;  %v4516_v31 = vadd.f32 %v4900_v27, %v311_v43  ;;  %v4526_v51 = vadd.f32 %v4902_v23, %v311_v43  ;;  %v4908_v18 = vld [vmem:[#allocation6_spill] sm:$0xff]  ;;  %v4910_v23 = vld [vmem:[#allocation12_spill] sm:$0xff] }
 0x2b9   : > { %v321_v19 = vpop.permute.xlu0 %320  ;;  %v4529_v3 = vadd.f32 %v4903_v62, %v311_v43  ;;  %v4534_v63 = vadd.f32 %v4904_v0, %v311_v43  ;;  %v4537_v41 = vadd.f32 %v4905_v58, %v311_v43  ;;  %v4540_v39 = vadd.f32 %v4317_v14, %v311_v43  ;;  %v4909_v14 = vld [vmem:[#allocation15_spill] sm:$0xff]  ;;  %v4912_v0 = vld [vmem:[#allocation21_spill] sm:$0xff] }
 0x2ba   : > { %v4500_v48 = vadd.f32 %v4308_v21, %v321_v19  ;;  %v4503_v46 = vadd.f32 %v4335_v4, %v321_v19  ;;  %v4901_v21 = vld [vmem:[#allocation29_spill] sm:$0xff]  ;;  %v4545_v1 = vadd.f32 %v4906_v47, %v321_v19  ;;  %v4548_v53 = vadd.f32 %v4907_v38, %v321_v19  ;;  %v4914_v47 = vld [vmem:[#allocation18_spill] sm:$0xff] }
 0x2bb   : > { %v4519_v57 = vadd.f32 %v4901_v21, %v311_v43  ;;  %v4555_v27 = vadd.f32 %v4908_v18, %v321_v19  ;;  %v4558_v43 = vadd.f32 %v4909_v14, %v321_v19  ;;  %v4563_v62 = vadd.f32 %v4910_v23, %v321_v19  ;;  %v4916_v18 = vld [vmem:[#allocation27_spill] sm:$0xff]  ;;  %v4918_v14 = vld [vmem:[#allocation24_spill] sm:$0xff] }
 0x2bc   : > { %4896 = vst [vmem:[#allocation34_spill] sm:$0xff] %v4500_v48  ;;  %4897 = vst [vmem:[#allocation30_spill] sm:$0xff] %v4503_v46  ;;  %v4566_v58 = vadd.f32 %v4912_v0, %v321_v19  ;;  %v4569_v38 = vadd.f32 %v4914_v47, %v321_v19  ;;  %v4574_v9 = vadd.f32 %v4916_v18, %v321_v19  ;;  %v4922_v0 = vld [vmem:[#allocation31_spill] sm:$0xff] }
 0x2bd   : > { %4911 = vst [vmem:[#allocation42_spill] sm:$0xff] %v4563_v62  ;;  %v4577_v59 = vadd.f32 %v4918_v14, %v321_v19  ;;  %v4580_v21 = vadd.f32 %v4920_v5, %v321_v19  ;;  %v4585_v10 = vadd.f32 %v4922_v0, %v321_v19  ;;  %v4924_v47 = vld [vmem:[#allocation43_spill] sm:$0xff]  ;;  %v4591_v4 = vadd.f32 %v4926_v7, %v321_v19 }
 0x2be   : > { %4913 = vst [vmem:[#allocation38_spill] sm:$0xff] %v4566_v58  ;;  %4915 = vst [vmem:[#allocation2_spill] sm:$0xff] %v4569_v38  ;;  %v4588_v26 = vadd.f32 %v4924_v47, %v321_v19  ;;  %v4928_v5 = vld [vmem:[#allocation47_spill] sm:$0xff] }
 0x2bf   : > { %4917 = vst [vmem:[#allocation8_spill] sm:$0xff] %v4574_v9  ;;  %4919 = vst [vmem:[#allocation5_spill] sm:$0xff] %v4577_v59  ;;  %v4598_v61 = vadd.f32 %v4928_v5, %v321_v19 }
 0x2c0   : > { %4921 = vst [vmem:[#allocation14_spill] sm:$0xff] %v4580_v21  ;;  %4923 = vst [vmem:[#allocation11_spill] sm:$0xff] %v4585_v10 }
 0x2c1   : > { %4925 = vst [vmem:[#allocation20_spill] sm:$0xff] %v4588_v26  ;;  %4927 = vst [vmem:[#allocation17_spill] sm:$0xff] %v4591_v4 }
 0x2c2   : > { %4929 = vst [vmem:[#allocation26_spill] sm:$0xff] %v4598_v61 }
 0x347   : > { %v1652_v47 = vpop.f32.mrb[144].mxu0 }
 0x348   : > { %v1659_v50 = vmul.f32 0.03125, %v1652_v47  ;;  %v3174_v13 = vpop.f32.mrb[145].mxu0 }
 0x349   : > { %v1655_v7 = vpop.f32.mrb[146].mxu0  ;;  %v1768_v29 = vpop.f32.mrb[176].mxu1 }
 0x34a   : > { %v1662_v44 = vsel %vm1661_vm3, %v1659_v50, -inf  ;;  %v1660_v18 = vmul.f32 0.03125, %v1655_v7  ;;  %v1775_v60 = vmul.f32 0.03125, %v1768_v29  ;;  %v3194_v12 = vpop.f32.mrb[177].mxu1  ;;  %v3175_v14 = vpop.f32.mrb[147].mxu0 }
 0x34b   : > { %v1771_v32 = vpop.f32.mrb[178].mxu1 }
 0x34c   : > { %v1663_v19 = vsel %vm1661_vm3, %v1660_v18, -inf  ;;  %v1776_v5 = vmul.f32 0.03125, %v1771_v32  ;;  %v3195_v35 = vpop.f32.mrb[179].mxu1  ;;  %v1777_v49 = vsel %vm1661_vm3, %v1775_v60, -inf }
 0x34d   : > { %v1664_v23 = vmax.f32 %v1662_v44, %v1663_v19 }
 0x34e   : > { %v1778_v0 = vsel %vm1661_vm3, %v1776_v5, -inf }
 0x34f   : > { %v1665_v47 = vrot.slane %v1664_v23, 4  ;;  %v1779_v13 = vmax.f32 %v1777_v49, %v1778_v0 }
 0x351   : > { %v1666_v40 = vmax.f32 %v1664_v23, %v1665_v47  ;;  %v1780_v48 = vrot.slane %v1779_v13, 4 }
 0x353   : > { %v1667_v46 = vrot.slane %v1666_v40, 2  ;;  %v1781_v4 = vmax.f32 %v1779_v13, %v1780_v48 }
 0x355   : > { %v1668_v7 = vmax.f32 %v1666_v40, %v1667_v46  ;;  %v1782_v29 = vrot.slane %v1781_v4, 2 }
 0x357   : > { %v1669_v12 = vrot.slane %v1668_v7, 1  ;;  %v1783_v14 = vmax.f32 %v1781_v4, %v1782_v29 }
 0x359   : > { %v1670_v61 = vmax.f32 %v1668_v7, %v1669_v12  ;;  %v1784_v10 = vrot.slane %v1783_v14, 1 }
 0x35b   : > { %v1671_v26 = vsub.f32 %v1659_v50, %v1670_v61  ;;  %v1672_v32 = vsub.f32 %v1660_v18, %v1670_v61  ;;  %v1785_v35 = vmax.f32 %v1783_v14, %v1784_v10 }
 0x35d   : > { %v1673_v44 = vmul.f32 1.442695, %v1671_v26  ;;  %v1675_v19 = vmul.f32 1.442695, %v1672_v32  ;;  %v1786_v59 = vsub.f32 %v1775_v60, %v1785_v35  ;;  %v1787_v21 = vsub.f32 %v1776_v5, %v1785_v35 }
 0x35f   : > { %3322 = vpow2.f32 %v1673_v44  ;;  %v1788_v38 = vmul.f32 1.442695, %v1786_v59  ;;  %v1790_v49 = vmul.f32 1.442695, %v1787_v21 }
 0x360   : > { %3324 = vpow2.f32 %v1675_v19 }
 0x361   : > { %3326 = vpow2.f32 %v1788_v38 }
 0x362   : > { %3328 = vpow2.f32 %v1790_v49 }
 0x369   : > { %v3323_v48 = vpop.eup %3322  ;;  %v2126_v40 = vpop.f32.mrb[180].mxu1 }
 0x36a   : > { %v3325_v46 = vpop.eup %3324  ;;  %v1677_v4 = vsel %vm1661_vm3, %v3323_v48, 0.0  ;;  %v2133_v23 = vmul.f32 0.03125, %v2126_v40  ;;  %v3250_v0 = vpop.f32.mrb[181].mxu1 }
 0x36b   : > { %v3327_v50 = vpop.eup %3326  ;;  %v1678_v61 = vsel %vm1661_vm3, %v3325_v46, 0.0  ;;  %v2129_v26 = vpop.f32.mrb[182].mxu1 }
 0x36c   : > { %v3329_v10 = vpop.eup %3328  ;;  %v1679_v60 = vadd.f32 %v1678_v61, %v1677_v4  ;;  %v1792_v18 = vsel %vm1661_vm3, %v3327_v50, 0.0  ;;  %v2135_v59 = vsel %vm1661_vm3, %v2133_v23, -inf  ;;  %v2134_v21 = vmul.f32 0.03125, %v2129_v26  ;;  %v3251_v38 = vpop.f32.mrb[183].mxu1 }
 0x36d   : > { %v1793_v5 = vsel %vm1661_vm3, %v3329_v10, 0.0 }
 0x36e   : > { %v1680_v47 = vrot.slane %v1679_v60, 4  ;;  %v1794_v13 = vadd.f32 %v1793_v5, %v1792_v18  ;;  %v2136_v7 = vsel %vm1661_vm3, %v2134_v21, -inf }
 0x36f   : > { %v2137_v29 = vmax.f32 %v2135_v59, %v2136_v7  ;;  %v1689_v7 = vld [vmem:[%s4802_s1] sm:$0xff] }
 0x370   : > { %v1681_v12 = vadd.f32 %v1680_v47, %v1679_v60  ;;  %v1795_v14 = vrot.slane %v1794_v13, 4 }
 0x371   : > { %v2138_v32 = vrot.slane %v2137_v29, 4 }
 0x372   : > { %v1682_v35 = vrot.slane %v1681_v12, 2  ;;  %v1796_v44 = vadd.f32 %v1795_v14, %v1794_v13 }
 0x373   : > { %v2139_v19 = vmax.f32 %v2137_v29, %v2138_v32  ;;  %v1690_v29 = vld [vmem:[%s4802_s1 + $0x8] sm:$0xff] }
 0x374   : > { %v1683_v49 = vadd.f32 %v1682_v35, %v1681_v12  ;;  %v1797_v40 = vrot.slane %v1796_v44, 2 }
 0x375   : > { %v2140_v4 = vrot.slane %v2139_v19, 2 }
 0x376   : > { %v1798_v0 = vadd.f32 %v1797_v40, %v1796_v44  ;;  %v1684_v61 = vrot.slane %v1683_v49, 1 }
 0x377   : > { %v2141_v26 = vmax.f32 %v2139_v19, %v2140_v4 }
 0x378   : > { %v1799_v38 = vrot.slane %v1798_v0, 1  ;;  %v1685_v9 = vadd.f32 %v1684_v61, %v1683_v49 }
 0x379   : > { %v2142_v62 = vrot.slane %v2141_v26, 1 }
 0x37a   : > { %v1800_v58 = vadd.f32 %v1799_v38, %v1798_v0  ;;  %3330 = vrcp.f32 %v1685_v9  ;;  %v4931_v38 = vpack.c.bf16 %v4435_v52, %v4432_v37  ;;  %v4934_v37 = vpack.c.bf16 %v4462_v33, %v4459_v25 }
 0x37b   : > { %v2143_v18 = vmax.f32 %v2141_v26, %v2142_v62  ;;  %v2622_v62 = vld [vmem:[%s4802_s1 + $0x10] sm:$0xff]  ;;  %v4935_v52 = vpack.c.bf16 %v4470_v17, %v4465_v24  ;;  %v4936_v25 = vpack.c.bf16 %v4421_v45, %v4418_v11  ;;  %v4937_v17 = vpack.c.bf16 %v4476_v20, %v4473_v22 }
 0x37c   : > { %3332 = vrcp.f32 %v1800_v58  ;;  %v2623_v58 = vld [vmem:[%s4802_s1 + $0x18] sm:$0xff]  ;;  %v4939_v11 = vpack.c.bf16 %v4494_v54, %v4487_v30  ;;  %v4940_v45 = vpack.c.bf16 %v4508_v34, %v4497_v55  ;;  %v4941_v22 = vpack.c.bf16 %v4516_v31, %v4513_v8  ;;  %v4947_v55 = vld [vmem:[#allocation38_spill] sm:$0xff]  ;;  %v4950_v31 = vld [vmem:[#allocation8_spill] sm:$0xff] }
 0x37d   : > { %v2144_v59 = vsub.f32 %v2133_v23, %v2143_v18  ;;  %v2145_v60 = vsub.f32 %v2134_v21, %v2143_v18  ;;  %v4942_v20 = vpack.c.bf16 %v4526_v51, %v4519_v57  ;;  %v4945_v30 = vpack.c.bf16 %v4548_v53, %v4545_v1  ;;  %v4948_v34 = vld [vmem:[#allocation42_spill] sm:$0xff]  ;;  %v4957_v1 = vld [vmem:[#allocation11_spill] sm:$0xff] }
 0x37e   : > { %v4946_v54 = vpack.c.bf16 %v4558_v43, %v4555_v27  ;;  %v4949_v8 = vpack.c.bf16 %v4947_v55, %v4948_v34  ;;  %v4951_v57 = vld [vmem:[#allocation2_spill] sm:$0xff]  ;;  %v4960_v43 = vld [vmem:[#allocation17_spill] sm:$0xff] }
 0x37f   : > { %v2146_v5 = vmul.f32 1.442695, %v2144_v59  ;;  %v2148_v47 = vmul.f32 1.442695, %v2145_v60  ;;  %v4952_v51 = vpack.c.bf16 %v4950_v31, %v4951_v57  ;;  %v4959_v27 = vld [vmem:[#allocation26_spill] sm:$0xff] }
 0x380   : > { %v4972_v55 = vld [vmem:[#allocation22_spill] sm:$0xff] }
 0x381   : > { %3334 = vpow2.f32 %v2146_v5  ;;  %v4932_v5 = vpack.c.bf16 %v4443_v42, %v4440_v16  ;;  %v2640_v42 = vld [vmem:[%s4802_s1 + $0x20] sm:$0xff] }
 0x382   : > { %3336 = vpow2.f32 %v2148_v47 }
 0x384   : > { %v3331_v13 = vpop.eup %3330 }
 0x385   : > { %v1687_v12 = vmul.f32 %v3331_v13, %v3323_v48  ;;  %v1688_v14 = vmul.f32 %v3331_v13, %v3325_v46 }
 0x386   : > { %v3333_v9 = vpop.eup %3332 }
 0x387   : > { %v1802_v23 = vmul.f32 %v3333_v9, %v3327_v50  ;;  %v1803_v21 = vmul.f32 %v3333_v9, %v3329_v10  ;;  %v1691_v32 = vadd.f32 %v1689_v7, %v1687_v12  ;;  %v1692_v35 = vadd.f32 %v1690_v29, %v1688_v14  ;;  %v4962_v12 = vld [vmem:[#allocation30_spill] sm:$0xff] }
 0x388   : > { %v4930_v50 = vpack.c.bf16 %v4429_v15, %v4426_v2  ;;  %v4933_v2 = vpack.c.bf16 %v4453_v56, %v4450_v36  ;;  %v2641_v36 = vld [vmem:[%s4802_s1 + $0x28] sm:$0xff]  ;;  %v4938_v7 = vpack.c.bf16 %v4484_v6, %v4481_v28  ;;  %v4943_v28 = vpack.c.bf16 %v4534_v63, %v4529_v3  ;;  %v4953_v3 = vld [vmem:[#allocation14_spill] sm:$0xff]  ;;  %v4954_v63 = vld [vmem:[#allocation5_spill] sm:$0xff] }
 0x389   : > { %v1807_v44 = vadd.f32 %v2622_v62, %v1802_v23  ;;  %v1808_v19 = vadd.f32 %v2623_v58, %v1803_v21  ;;  %v1693_v49 = vpack.c.bf16 %v1692_v35, %v1691_v32  ;;  %v4944_v6 = vpack.c.bf16 %v4540_v39, %v4537_v41  ;;  %v4956_v39 = vld [vmem:[#allocation20_spill] sm:$0xff]  ;;  %v4963_v14 = vld [vmem:[#allocation34_spill] sm:$0xff]  ;;  %v4726_v62 = vpop.permute.xlu0 %325  ;;  %v2363_v32 = vpop.permute.xlu1 %2362 }
 0x38a   : > { %v4955_v41 = vpack.c.bf16 %v4953_v3, %v4954_v63  ;;  %v4958_v53 = vpack.c.bf16 %v4956_v39, %v4957_v1  ;;  %v4961_v29 = vpack.c.bf16 %v4959_v27, %v4960_v43  ;;  %v4964_v9 = vpack.c.bf16 %v4962_v12, %v4963_v14  ;;  %v4973_v43 = vld [vmem:[#allocation32_spill] sm:$0xff] }
 0x38b   : > { %v3335_v40 = vpop.eup %3334  ;;  %v1809_v4 = vpack.c.bf16 %v1808_v19, %v1807_v44  ;;  %v4965_v19 = vld [vmem:[#allocation7_spill] sm:$0xff]  ;;  %v823_v34 = vadd.f32 %v4972_v55, %v4726_v62 }
 0x38c   : > { %v3337_v48 = vpop.eup %3336  ;;  %v2150_v46 = vsel %vm1661_vm3, %v3335_v40, 0.0 }
 0x38d   : > { %v2151_v0 = vsel %vm1661_vm3, %v3337_v48, 0.0  ;;  %3196 = vmatprep.subr.bf16.mxu0 %v1809_v4  ;;  %v2348_v58 = vpop.permute.xlu0 %2347  ;;  %v2373_v44 = vpop.permute.xlu1 %2372 }
 0x38e   : > { %v2152_v61 = vadd.f32 %v2151_v0, %v2150_v46  ;;  %3197 = vmatpush3.bf16.msra.mxu0 %v1809_v4  ;;  %v4966_v4 = vld [vmem:[#allocation4_spill] sm:$0xff] }
 0x38f   : > { %3214 = vmatprep.subr.bf16.mxu0 %v1693_v49 }
 0x390   : > { %v2153_v26 = vrot.slane %v2152_v61, 4 }
 0x391   : > { %3199 = vmatmul.mubr.msk.bf16.vlgmr.msra.gmra.mrb[148].mxu0 %vm1661_vm3, %v4930_v50  ;;  %v2353_v23 = vpop.permute.xlu0 %2352 }
 0x392   : > { %v2154_v10 = vadd.f32 %v2153_v26, %v2152_v61  ;;  %3202 = vmatprep.mubr.msk.bf16.mxu0 %vm1661_vm3, %v4931_v38  ;;  %3215 = vmatpush3.bf16.msra.mxu0 %v1693_v49  ;;  %v595_v49 = vadd.f32 %v4965_v19, %v4726_v62  ;;  %v4967_v61 = vld [vmem:[#allocation16_spill] sm:$0xff] }
 0x393   : > { %v671_v26 = vadd.f32 %v4967_v61, %v4726_v62 }
 0x394   : > { %v2155_v18 = vrot.slane %v2154_v10, 2 }
 0x395   : > { %v2358_v21 = vpop.permute.xlu0 %2357 }
 0x396   : > { %v2156_v59 = vadd.f32 %v2155_v18, %v2154_v10  ;;  %v4968_v18 = vld [vmem:[#allocation10_spill] sm:$0xff] }
 0x398   : > { %v2157_v60 = vrot.slane %v2156_v59, 1 }
 0x399   : > { %3203 = vmatmul.mubr.msk.bf16.gmra.mrb[152].mxu0 %vm1661_vm3, %v4932_v5  ;;  %v2368_v35 = vpop.permute.xlu0 %2367 }
 0x39a   : > { %3206 = vmatprep.mubr.msk.bf16.mxu0 %vm1661_vm3, %v4933_v2  ;;  %v2158_v15 = vadd.f32 %v2157_v60, %v2156_v59  ;;  %v519_v59 = vadd.f32 %v4968_v18, %v4726_v62 }
 0x39c   : > { %3338 = vrcp.f32 %v2158_v15  ;;  %v2383_v15 = vpop.permute.xlu1 %2382 }
 0x39d   : > { %v2378_v50 = vpop.permute.xlu0 %2377 }
 0x3a1   : > { %3207 = vmatmul.mubr.msk.bf16.gmra.mrb[156].mxu0 %vm1661_vm3, %v4934_v37 }
 0x3a2   : > { %3210 = vmatprep.mubr.msk.bf16.mxu0 %vm1661_vm3, %v4935_v52 }
 0x3a6   : > { %v3339_v16 = vpop.eup %3338 }
 0x3a7   : > { %v2160_v56 = vmul.f32 %v3339_v16, %v3335_v40  ;;  %v2161_v47 = vmul.f32 %v3339_v16, %v3337_v48  ;;  %v443_v48 = vadd.f32 %v4966_v4, %v4726_v62 }
 0x3a9   : > { %3211 = vmatmul.mubr.msk.bf16.gmra.mrb[160].mxu0 %vm1661_vm3, %v4936_v25  ;;  %v2165_v33 = vadd.f32 %v2640_v42, %v2160_v56  ;;  %v2166_v24 = vadd.f32 %v2641_v36, %v2161_v47  ;;  %v4969_v25 = vld [vmem:[#allocation19_spill] sm:$0xff] }
 0x3aa   : > { %3216 = vmatprep.mubr.msk.bf16.mxu0 %vm1661_vm3, %v4937_v17 }
 0x3ab   : > { %v2167_v13 = vpack.c.bf16 %v2166_v24, %v2165_v33  ;;  %v899_v33 = vadd.f32 %v4969_v25, %v4726_v62  ;;  %v2388_v24 = vpop.permute.xlu0 %2387 }
 0x3ad   : > { %3252 = vmatprep.subr.bf16.mxu0 %v2167_v13 }
 0x3af   : > { %v2398_v39 = vpop.permute.xlu0 %2397 }
 0x3b1   : > { %3217 = vmatmul.mubr.msk.bf16.vlgmr.msra.gmra.mrb[148].mxu0 %vm1661_vm3, %v4938_v7  ;;  %v4970_v7 = vld [vmem:[#allocation13_spill] sm:$0xff] }
 0x3b2   : > { %3253 = vmatpush3.bf16.msra.mxu0 %v2167_v13  ;;  %3220 = vmatprep.mubr.msk.bf16.mxu0 %vm1661_vm3, %v4939_v11  ;;  %v747_v11 = vadd.f32 %v4970_v7, %v4726_v62 }
 0x3b3   : > { %v2408_v61 = vpop.permute.xlu0 %2407 }
 0x3b9   : > { %3221 = vmatmul.mubr.msk.bf16.gmra.mrb[152].mxu0 %vm1661_vm3, %v4940_v45 }
 0x3ba   : > { %3224 = vmatprep.mubr.msk.bf16.mxu0 %vm1661_vm3, %v4941_v22 }
 0x3c1   : > { %3225 = vmatmul.mubr.msk.bf16.gmra.mrb[156].mxu0 %vm1661_vm3, %v4942_v20  ;;  %v4971_v20 = vld [vmem:[#allocation28_spill] sm:$0xff] }
 0x3c2   : > { %3228 = vmatprep.mubr.msk.bf16.mxu0 %vm1661_vm3, %v4943_v28  ;;  %v975_v28 = vadd.f32 %v4971_v20, %v4726_v62 }
 0x3c9   : > { %3229 = vmatmul.mubr.msk.bf16.gmra.mrb[160].mxu0 %vm1661_vm3, %v4944_v6  ;;  %v2393_v6 = vpop.permute.xlu1 %2392 }
 0x3ca   : > { %3254 = vmatprep.mubr.msk.bf16.mxu0 %vm1661_vm3, %v4945_v30 }
 0x3cd   : > { %v2403_v12 = vpop.permute.xlu1 %2402 }
 0x3d1   : > { %3255 = vmatmul.mubr.msk.bf16.vlgmr.msra.gmra.mrb[148].mxu0 %vm1661_vm3, %v4946_v54  ;;  %v2413_v18 = vpop.permute.xlu1 %2412 }
 0x3d2   : > { %3258 = vmatprep.mubr.msk.bf16.mxu0 %vm1661_vm3, %v4949_v8 }
 0x3d5   : > { %v2423_v20 = vpop.permute.xlu1 %2422 }
 0x3d9   : > { %3259 = vmatmul.mubr.msk.bf16.gmra.mrb[152].mxu0 %vm1661_vm3, %v4952_v51 }
 0x3da   : > { %3262 = vmatprep.mubr.msk.bf16.mxu0 %vm1661_vm3, %v4955_v41 }
 0x3e1   : > { %3263 = vmatmul.mubr.msk.bf16.gmra.mrb[156].mxu0 %vm1661_vm3, %v4958_v53 }
 0x3e2   : > { %3266 = vmatprep.mubr.msk.bf16.mxu0 %vm1661_vm3, %v4961_v29  ;;  %v1203_v29 = vadd.f32 %v4973_v43, %v4726_v62 }
 0x3e9   : > { %3267 = vmatmul.mubr.msk.bf16.gmra.mrb[160].mxu0 %vm1661_vm3, %v4964_v9 }
 0x4a4   : > { %v3256_v40 = vpop.f32.mrb[148].mxu0 }
 0x4a5   : > { %v2315_v46 = vadd.f32 %v3256_v40, %v595_v49  ;;  %v2234_v0 = vpop.f32.mrb[149].mxu0  ;;  %v4976_v40 = vld [vmem:[#allocation36_spill] sm:$0xff] }
 0x4a6   : > { %v2313_v10 = vadd.f32 %v2234_v0, %v443_v48  ;;  %v3257_v38 = vpop.f32.mrb[150].mxu0  ;;  %v1127_v4 = vadd.f32 %v4976_v40, %v4726_v62 }
 0x4a7   : > { %v2427_v60 = vadd.f32 %v2358_v21, %v2315_v46  ;;  %v2316_v5 = vadd.f32 %v3257_v38, %v671_v26  ;;  %v2237_v2 = vpop.f32.mrb[151].mxu0 }
 0x4a8   : > { %v2425_v37 = vadd.f32 %v2348_v58, %v2313_v10  ;;  %v2314_v52 = vadd.f32 %v2237_v2, %v519_v59  ;;  %v4974_v58 = vld [vmem:[#allocation25_spill] sm:$0xff] }
 0x4a9   : > { %v2443_v16 = vmax.f32 %v2427_v60, 0.0  ;;  %v2428_v42 = vadd.f32 %v2363_v32, %v2316_v5  ;;  %v4977_v5 = vld [vmem:[#allocation49_spill] sm:$0xff] }
 0x4aa   : > { %v2441_v36 = vmax.f32 %v2425_v37, 0.0  ;;  %v2426_v56 = vadd.f32 %v2353_v23, %v2314_v52  ;;  %v1051_v23 = vadd.f32 %v4974_v58, %v4726_v62  ;;  %v1507_v2 = vadd.f32 %v4977_v5, %v4726_v62 }
 0x4ab   : > { %2459 = vst.msk [vmem:[%s4740_s7 + $0x10] sm:$0xff] %vm1661_vm3, %v2443_v16  ;;  %v2444_v47 = vmax.f32 %v2428_v42, 0.0  ;;  %v4978_v16 = vld [vmem:[#allocation40_spill] sm:$0xff] }
 0x4ac   : > { %2457 = vst.msk [vmem:[%s4740_s7] sm:$0xff] %vm1661_vm3, %v2441_v36  ;;  %v2442_v17 = vmax.f32 %v2426_v56, 0.0  ;;  %v3260_v13 = vpop.f32.mrb[152].mxu0  ;;  %v1355_v42 = vadd.f32 %v4978_v16, %v4726_v62 }
 0x4ad   : > { %2460 = vst.msk [vmem:[%s4740_s7 + $0x18] sm:$0xff] %vm1661_vm3, %v2444_v47  ;;  %v2319_v45 = vadd.f32 %v3260_v13, %v899_v33  ;;  %v2250_v22 = vpop.f32.mrb[153].mxu0  ;;  %v4979_v47 = vld [vmem:[#allocation50_spill] sm:$0xff]  ;;  %v2418_v33 = vpop.permute.xlu0 %2417  ;;  %v4980_v13 = vld [vmem:[#allocation48_spill] sm:$0xff] }
 0x4ae   : > { %2458 = vst.msk [vmem:[%s4740_s7 + $0x8] sm:$0xff] %vm1661_vm3, %v2442_v17  ;;  %v2317_v30 = vadd.f32 %v2250_v22, %v747_v11  ;;  %v3261_v54 = vpop.f32.mrb[154].mxu0  ;;  %v1583_v25 = vadd.f32 %v4979_v47, %v4726_v62  ;;  %v1431_v7 = vadd.f32 %v4980_v13, %v4726_v62 }
 0x4af   : > { %v2431_v8 = vadd.f32 %v2378_v50, %v2319_v45  ;;  %v2320_v31 = vadd.f32 %v3261_v54, %v975_v28  ;;  %v2253_v57 = vpop.f32.mrb[155].mxu0 }
 0x4b0   : > { %v2429_v51 = vadd.f32 %v2368_v35, %v2317_v30  ;;  %v2318_v3 = vadd.f32 %v2253_v57, %v823_v34  ;;  %v4975_v35 = vld [vmem:[#allocation44_spill] sm:$0xff] }
 0x4b1   : > { %v2447_v63 = vmax.f32 %v2431_v8, 0.0  ;;  %v2432_v41 = vadd.f32 %v2383_v15, %v2320_v31 }
 0x4b2   : > { %v2445_v1 = vmax.f32 %v2429_v51, 0.0  ;;  %v2430_v53 = vadd.f32 %v2373_v44, %v2318_v3  ;;  %v1279_v44 = vadd.f32 %v4975_v35, %v4726_v62 }
 0x4b3   : > { %2463 = vst.msk [vmem:[%s4740_s7 + $0x30] sm:$0xff] %vm1661_vm3, %v2447_v63  ;;  %v2448_v27 = vmax.f32 %v2432_v41, 0.0 }
 0x4b4   : > { %2461 = vst.msk [vmem:[%s4740_s7 + $0x20] sm:$0xff] %vm1661_vm3, %v2445_v1  ;;  %v2446_v14 = vmax.f32 %v2430_v53, 0.0  ;;  %v3264_v9 = vpop.f32.mrb[156].mxu0 }
 0x4b5   : > { %2464 = vst.msk [vmem:[%s4740_s7 + $0x38] sm:$0xff] %vm1661_vm3, %v2448_v27  ;;  %v2323_v21 = vadd.f32 %v3264_v9, %v1203_v29  ;;  %v2266_v32 = vpop.f32.mrb[157].mxu0 }
 0x4b6   : > { %2462 = vst.msk [vmem:[%s4740_s7 + $0x28] sm:$0xff] %vm1661_vm3, %v2446_v14  ;;  %v2321_v19 = vadd.f32 %v2266_v32, %v1051_v23  ;;  %v3265_v49 = vpop.f32.mrb[158].mxu0 }
 0x4b7   : > { %v2435_v48 = vadd.f32 %v2398_v39, %v2323_v21  ;;  %v2324_v46 = vadd.f32 %v3265_v49, %v1279_v44  ;;  %v2269_v0 = vpop.f32.mrb[159].mxu0 }
 0x4b8   : > { %v2433_v26 = vadd.f32 %v2388_v24, %v2321_v19  ;;  %v2322_v50 = vadd.f32 %v2269_v0, %v1127_v4 }
 0x4b9   : > { %v2451_v10 = vmax.f32 %v2435_v48, 0.0  ;;  %v2436_v38 = vadd.f32 %v2403_v12, %v2324_v46 }
 0x4ba   : > { %v2449_v59 = vmax.f32 %v2433_v26, 0.0  ;;  %v2434_v60 = vadd.f32 %v2393_v6, %v2322_v50 }
 0x4bb   : > { %2467 = vst.msk [vmem:[%s4740_s7 + $0x50] sm:$0xff] %vm1661_vm3, %v2451_v10  ;;  %v2452_v15 = vmax.f32 %v2436_v38, 0.0 }
 0x4bc   : > { %2465 = vst.msk [vmem:[%s4740_s7 + $0x40] sm:$0xff] %vm1661_vm3, %v2449_v59  ;;  %v2450_v37 = vmax.f32 %v2434_v60, 0.0  ;;  %v3268_v52 = vpop.f32.mrb[160].mxu0 }
 0x4bd   : > { %2468 = vst.msk [vmem:[%s4740_s7 + $0x58] sm:$0xff] %vm1661_vm3, %v2452_v15  ;;  %v2327_v36 = vadd.f32 %v3268_v52, %v1507_v2  ;;  %v2282_v56 = vpop.f32.mrb[161].mxu0 }
 0x4be   : > { %2466 = vst.msk [vmem:[%s4740_s7 + $0x48] sm:$0xff] %vm1661_vm3, %v2450_v37  ;;  %v2325_v24 = vadd.f32 %v2282_v56, %v1355_v42  ;;  %v3269_v17 = vpop.f32.mrb[162].mxu0 }
 0x4bf   : > { %v2439_v11 = vadd.f32 %v2418_v33, %v2327_v36  ;;  %v2328_v45 = vadd.f32 %v3269_v17, %v1583_v25  ;;  %v2285_v22 = vpop.f32.mrb[163].mxu0 }
 0x4c0   : > { %v2437_v28 = vadd.f32 %v2408_v61, %v2325_v24  ;;  %v2326_v6 = vadd.f32 %v2285_v22, %v1431_v7 }
 0x4c1   : > { %v2455_v30 = vmax.f32 %v2439_v11, 0.0  ;;  %v2440_v54 = vadd.f32 %v2423_v20, %v2328_v45 }
 0x4c2   : > { %v2453_v55 = vmax.f32 %v2437_v28, 0.0  ;;  %v2438_v34 = vadd.f32 %v2413_v18, %v2326_v6 }
 0x4c3   : > { %2471 = vst.msk [vmem:[%s4740_s7 + $0x70] sm:$0xff] %vm1661_vm3, %v2455_v30  ;;  %v2456_v8 = vmax.f32 %v2440_v54, 0.0 }
 0x4c4   : > { %2469 = vst.msk [vmem:[%s4740_s7 + $0x60] sm:$0xff] %vm1661_vm3, %v2453_v55  ;;  %v2454_v31 = vmax.f32 %v2438_v34, 0.0 }
 0x4c5   : > { %2472 = vst.msk [vmem:[%s4740_s7 + $0x78] sm:$0xff] %vm1661_vm3, %v2456_v8 }
 0x4c6   : > { %2470 = vst.msk [vmem:[%s4740_s7 + $0x68] sm:$0xff] %vm1661_vm3, %v2454_v31 }
 0x4c7 PF: > { %s15_s18 = sadd.s32 1, %s3346_s18  }
 0x4c8   : > { %p12_p4 = scmp.ge.s32.totalorder %s15_s18, 4  }
 0x4ca   :  { %14 = sbr.rel (!%p12_p4) target bundleno = 1 (0x1), region = 72 }

</bundles_post_ra>
